<compile_context>
chip_gen: v7x
topology: tpu7x:2x2x1
jax: 0.10.0
libtpu: 0.0.40
codegen_flags: <defaults>
</compile_context>

<pallas_src>
import functools

import jax
import jax.numpy as jnp
from jax import lax
from jax.experimental import pallas as pl
from jax.experimental.pallas import tpu as pltpu

NUM_LAYERS = 3  # config.layer_nums


def _lstm_chunk_kernel(xg0_ref, whh0_ref, wcat_ref, bcat_ref, h0_ref, c0_ref,
                       y_ref, hn_ref, cn_ref, h_scr, c_scr):
    s = pl.program_id(0)
    ts = xg0_ref.shape[0]
    H = h0_ref.shape[2]

    @pl.when(s == 0)
    def _init():
        h_scr[...] = h0_ref[...].astype(jnp.float32)
        c_scr[...] = c0_ref[...].astype(jnp.float32)

    whh0 = whh0_ref[...]          # (H, 4H)
    w1 = wcat_ref[0]              # (2H, 4H)
    w2 = wcat_ref[1]              # (2H, 4H)
    b1 = bcat_ref[0]              # (1, 4H)
    b2 = bcat_ref[1]              # (1, 4H)

    def cell(gates, c_prev):
        # gate columns reordered in the wrapper to [i, f, o, g]:
        sig = jax.nn.sigmoid(gates[:, :3 * H])   # one contiguous (B, 3H) slab -> EUP
        g_g = jnp.tanh(gates[:, 3 * H:])         # one (B, H) slab
        i_g = sig[:, 0 * H:1 * H]
        f_g = sig[:, 1 * H:2 * H]
        o_g = sig[:, 2 * H:3 * H]
        c_new = f_g * c_prev + i_g * g_g
        h_new = o_g * jnp.tanh(c_new)
        return h_new, c_new

    def step(t, carry):
        h0, c0, h1, c1, h2, c2 = carry
        # layer 0: input transform (incl. biases) precomputed in wrapper; only recurrent matmul here
        g0 = xg0_ref[t] + jnp.dot(h0, whh0, preferred_element_type=jnp.float32)
        h0, c0 = cell(g0, c0)
        # layers 1/2: single fused matmul per layer: [x, h_prev] @ [W_ih^T; W_hh^T]
        g1 = jnp.dot(jnp.concatenate([h0, h1], axis=-1), w1,
                     preferred_element_type=jnp.float32) + b1
        h1, c1 = cell(g1, c1)
        g2 = jnp.dot(jnp.concatenate([h1, h2], axis=-1), w2,
                     preferred_element_type=jnp.float32) + b2
        h2, c2 = cell(g2, c2)
        y_ref[t] = h2.astype(y_ref.dtype)
        return (h0, c0, h1, c1, h2, c2)

    carry = (h_scr[0], c_scr[0], h_scr[1], c_scr[1], h_scr[2], c_scr[2])
    carry = lax.fori_loop(0, ts, step, carry, unroll=True)
    h0, c0, h1, c1, h2, c2 = carry
    h_scr[0] = h0
    c_scr[0] = c0
    h_scr[1] = h1
    c_scr[1] = c1
    h_scr[2] = h2
    c_scr[2] = c2

    @pl.when(s == pl.num_programs(0) - 1)
    def _finalize():
        hn_ref[...] = h_scr[...].astype(hn_ref.dtype)
        cn_ref[...] = c_scr[...].astype(cn_ref.dtype)


def _run_lstm_kernel(xg0, whh0_t, wcat, bcat, h0, c0, ts):
    S, B, G = xg0.shape
    H = h0.shape[2]
    L = NUM_LAYERS
    out_shapes = (
        jax.ShapeDtypeStruct((S, B, H), jnp.float32),   # y (time-major)
        jax.ShapeDtypeStruct((L, B, H), jnp.float32),   # h_n
        jax.ShapeDtypeStruct((L, B, H), jnp.float32),   # c_n
    )
    grid_spec = pltpu.PrefetchScalarGridSpec(
        num_scalar_prefetch=0,
        grid=(S // ts,),
        in_specs=[
            pl.BlockSpec((ts, B, G), lambda s: (s, 0, 0)),       # precomputed layer-0 gates chunk
            pl.BlockSpec((H, G), lambda s: (0, 0)),              # W_hh[0]^T (resident)
            pl.BlockSpec((L - 1, 2 * H, G), lambda s: (0, 0, 0)),  # fused [W_ih^T; W_hh^T] layers 1..2
            pl.BlockSpec((L - 1, 1, G), lambda s: (0, 0, 0)),    # combined biases layers 1..2
            pl.BlockSpec((L, B, H), lambda s: (0, 0, 0)),        # h0
            pl.BlockSpec((L, B, H), lambda s: (0, 0, 0)),        # c0
        ],
        out_specs=[
            pl.BlockSpec((ts, B, H), lambda s: (s, 0, 0)),       # y chunk
            pl.BlockSpec((L, B, H), lambda s: (0, 0, 0)),        # h_n (written on last step)
            pl.BlockSpec((L, B, H), lambda s: (0, 0, 0)),        # c_n
        ],
        scratch_shapes=[
            pltpu.VMEM((L, B, H), jnp.float32),  # h carry across chunks
            pltpu.VMEM((L, B, H), jnp.float32),  # c carry across chunks
        ],
    )
    return pl.pallas_call(
        _lstm_chunk_kernel,
        out_shape=out_shapes,
        grid_spec=grid_spec,
        compiler_params=pltpu.CompilerParams(
            dimension_semantics=("arbitrary",)),  # sequential recurrence over time chunks
    )(xg0, whh0_t, wcat, bcat, h0, c0)


def _pick_chunk(S, cap=16):
    """Largest divisor of S that is <= cap (chunk of timesteps per grid step)."""
    ts = min(S, cap)
    while S % ts:
        ts -= 1
    return max(ts, 1)


def _reorder_gates(w, H, axis):
    """PyTorch gate order [i, f, g, o] -> [i, f, o, g] along `axis`."""
    i, f, g, o = jnp.split(w, 4, axis=axis)
    return jnp.concatenate([i, f, o, g], axis=axis)


def init_params(key, num_labels, hidden_size):
    """Deterministic synthetic init mirroring the PyTorch module's parameter shapes."""
    H = hidden_size
    keys = jax.random.split(key, 1 + 4 * NUM_LAYERS)
    params = {"embed": jax.random.normal(keys[0], (num_labels, H), jnp.float32)}
    bound = 1.0 / jnp.sqrt(H)
    w_ih, w_hh, b_ih, b_hh = [], [], [], []
    for l in range(NUM_LAYERS):
        k = keys[1 + 4 * l: 1 + 4 * (l + 1)]
        w_ih.append(jax.random.uniform(k[0], (4 * H, H), jnp.float32, -bound, bound))
        w_hh.append(jax.random.uniform(k[1], (4 * H, H), jnp.float32, -bound, bound))
        b_ih.append(jax.random.uniform(k[2], (4 * H,), jnp.float32, -bound, bound))
        b_hh.append(jax.random.uniform(k[3], (4 * H,), jnp.float32, -bound, bound))
    params["w_ih"] = jnp.stack(w_ih)  # (L, 4H, H), PyTorch gate order [i, f, g, o]
    params["w_hh"] = jnp.stack(w_hh)  # (L, 4H, H)
    params["b_ih"] = jnp.stack(b_ih)  # (L, 4H)
    params["b_hh"] = jnp.stack(b_hh)  # (L, 4H)
    return params


@jax.jit
def decoder_forward(input_ids, hidden_states, params):
    """Matches Decoder_exp3_3.forward: returns (out, (h_n, c_n)) with out batch_first."""
    H = params["embed"].shape[1]
    L = NUM_LAYERS
    emb = jnp.take(params["embed"], input_ids, axis=0)        # embedding gather (wrapper glue)
    B, S, _ = emb.shape

    if hidden_states is None:
        h0 = jnp.zeros((L, B, H), jnp.float32)
        c0 = jnp.zeros((L, B, H), jnp.float32)
    else:
        h0, c0 = hidden_states
    h0 = h0.astype(jnp.float32)
    c0 = c0.astype(jnp.float32)

    # Reorder gate columns, combine biases, pre-transpose weights.
    w_ih = _reorder_gates(params["w_ih"], H, axis=1)          # (L, 4H, H) -> gate order [i,f,o,g]
    w_hh = _reorder_gates(params["w_hh"], H, axis=1)
    b = _reorder_gates(params["b_ih"] + params["b_hh"], H, axis=1)  # (L, 4H) combined bias
    w_ih_t = jnp.transpose(w_ih, (0, 2, 1))                   # (L, H, 4H)
    w_hh_t = jnp.transpose(w_hh, (0, 2, 1))                   # (L, H, 4H)

    x_tm = jnp.transpose(emb, (1, 0, 2)).astype(jnp.float32)  # (S, B, H) time-major
    # Layer-0 input transform for all timesteps as one batched GEMM (no recurrence).
    xg0 = jnp.einsum("sbh,hg->sbg", x_tm, w_ih_t[0]) + b[0][None, None, :]   # (S, B, 4H)
    whh0_t = w_hh_t[0]                                        # (H, 4H)
    wcat = jnp.concatenate([w_ih_t[1:], w_hh_t[1:]], axis=1)  # (L-1, 2H, 4H)
    bcat = b[1:, None, :]                                     # (L-1, 1, 4H)

    ts = _pick_chunk(S)
    y_tm, h_n, c_n = _run_lstm_kernel(xg0, whh0_t, wcat, bcat, h0, c0, ts)
    out = jnp.transpose(y_tm, (1, 0, 2))                      # back to batch_first (B, S, H)
    return out, (h_n, c_n)


def _reference_forward(input_ids, hidden_states, params):
    """Pure-JAX f32 reference (exact-precision matmuls) for validation."""
    H = params["embed"].shape[1]
    emb = jnp.take(params["embed"], input_ids, axis=0)
    B, S, _ = emb.shape
    if hidden_states is None:
        h = jnp.zeros((NUM_LAYERS, B, H), jnp.float32)
        c = jnp.zeros((NUM_LAYERS, B, H), jnp.float32)
    else:
        h, c = hidden_states
    hs = [h[l] for l in range(NUM_LAYERS)]
    cs = [c[l] for l in range(NUM_LAYERS)]
    hp = lax.Precision.HIGHEST
    ys = []
    for t in range(S):
        x = emb[:, t, :]
        for l in range(NUM_LAYERS):
            gates = (jnp.dot(x, params["w_ih"][l].T, precision=hp) + params["b_ih"][l]
                     + jnp.dot(hs[l], params["w_hh"][l].T, precision=hp) + params["b_hh"][l])
            i_g, f_g, g_g, o_g = jnp.split(gates, 4, axis=-1)
            i_g, f_g, o_g = jax.nn.sigmoid(i_g), jax.nn.sigmoid(f_g), jax.nn.sigmoid(o_g)
            g_g = jnp.tanh(g_g)
            cs[l] = f_g * cs[l] + i_g * g_g
            hs[l] = o_g * jnp.tanh(cs[l])
            x = hs[l]
        ys.append(x)
    return jnp.stack(ys, axis=1), (jnp.stack(hs), jnp.stack(cs))


if __name__ == "__main__":
    num_labels, hidden_size = 10, 32
    batch, seq = 2, 8

    key = jax.random.PRNGKey(0)
    k_params, k_in, k_h, k_c = jax.random.split(key, 4)
    params = init_params(k_params, num_labels, hidden_size)

    input_ids = jax.random.randint(k_in, (batch, seq), 0, num_labels)
    h0 = jax.random.normal(k_h, (NUM_LAYERS, batch, hidden_size), jnp.float32)
    c0 = jax.random.normal(k_c, (NUM_LAYERS, batch, hidden_size), jnp.float32)

    # --- with provided hidden state ---
    out, (h_n, c_n) = decoder_forward(input_ids, (h0, c0), params)
    jax.block_until_ready((out, h_n, c_n))
    ref_out, (ref_h, ref_c) = _reference_forward(input_ids, (h0, c0), params)
    assert out.shape == (batch, seq, hidden_size)
    assert h_n.shape == (NUM_LAYERS, batch, hidden_size)
    # Kernel matmuls run at default MXU precision (single-pass bf16, f32 accumulate) instead of
    # the f32-exact reference, so the tolerance is relaxed vs. the previous HIGHEST-precision run.
    tol = dict(rtol=5e-2, atol=5e-2)
    assert jnp.allclose(out, ref_out, **tol), "output mismatch"
    assert jnp.allclose(h_n, ref_h, **tol), "h_n mismatch"
    assert jnp.allclose(c_n, ref_c, **tol), "c_n mismatch"

    # --- hidden_states=None path (zero initial state) ---
    out0, (hn0, cn0) = decoder_forward(input_ids, None, params)
    jax.block_until_ready((out0, hn0, cn0))
    ref0, (rh0, rc0) = _reference_forward(input_ids, None, params)
    assert jnp.allclose(out0, ref0, **tol) and jnp.allclose(hn0, rh0, **tol) \
        and jnp.allclose(cn0, rc0, **tol), "zero-state mismatch"

    print("KERNEL_OK")
</pallas_src>

<mosaic_0001>
module attributes {stable_mosaic.version = 11 : i64} {
  func.func @_lstm_chunk_kernel(%arg0: i32, %arg1: memref<8x2x128xf32, #tpu.memory_space<vmem>>, %arg2: memref<32x128xf32, #tpu.memory_space<vmem>>, %arg3: memref<2x64x128xf32, #tpu.memory_space<vmem>>, %arg4: memref<2x1x128xf32, #tpu.memory_space<vmem>>, %arg5: memref<3x2x32xf32, #tpu.memory_space<vmem>>, %arg6: memref<3x2x32xf32, #tpu.memory_space<vmem>>, %arg7: memref<8x2x32xf32, #tpu.memory_space<vmem>>, %arg8: memref<3x2x32xf32, #tpu.memory_space<vmem>>, %arg9: memref<3x2x32xf32, #tpu.memory_space<vmem>>, %arg10: memref<3x2x32xf32, #tpu.memory_space<vmem>>, %arg11: memref<3x2x32xf32, #tpu.memory_space<vmem>>) attributes {dimension_semantics = [#tpu.dimension_semantics<arbitrary>], iteration_bounds = array<i64: 1>, scalar_prefetch = 0 : i64, scratch_operands = 2 : i64, tpu.core_type = #tpu.core_type<tc>, window_params = [{transform_indices = @transform_0, window_bounds = array<i64: 8, 2, 128>}, {pipeline_mode = #tpu.pipeline_mode<synchronous>, transform_indices = @transform_1, window_bounds = array<i64: 32, 128>}, {pipeline_mode = #tpu.pipeline_mode<synchronous>, transform_indices = @transform_2, window_bounds = array<i64: 2, 64, 128>}, {pipeline_mode = #tpu.pipeline_mode<synchronous>, transform_indices = @transform_3, window_bounds = array<i64: 2, 1, 128>}, {pipeline_mode = #tpu.pipeline_mode<synchronous>, transform_indices = @transform_4, window_bounds = array<i64: 3, 2, 32>}, {pipeline_mode = #tpu.pipeline_mode<synchronous>, transform_indices = @transform_5, window_bounds = array<i64: 3, 2, 32>}, {transform_indices = @transform_6, window_bounds = array<i64: 8, 2, 32>}, {pipeline_mode = #tpu.pipeline_mode<synchronous>, transform_indices = @transform_7, window_bounds = array<i64: 3, 2, 32>}, {pipeline_mode = #tpu.pipeline_mode<synchronous>, transform_indices = @transform_8, window_bounds = array<i64: 3, 2, 32>}]} {
    %c0_i32 = arith.constant 0 : i32
    %0 = arith.cmpi eq, %arg0, %c0_i32 : i32
    %1 = arith.extui %0 : i1 to i32
    %c0_i32_0 = arith.constant 0 : i32
    %2 = arith.cmpi ne, %1, %c0_i32_0 : i32
    scf.if %2 {
      %c0_130 = arith.constant 0 : index
      %c0_131 = arith.constant 0 : index
      %c0_132 = arith.constant 0 : index
      %565 = vector.load %arg5[%c0_130, %c0_131, %c0_132] : memref<3x2x32xf32, #tpu.memory_space<vmem>>, vector<3x2x32xf32>
      %c0_133 = arith.constant 0 : index
      %c0_134 = arith.constant 0 : index
      %c0_135 = arith.constant 0 : index
      %566 = vector.load %arg10[%c0_133, %c0_134, %c0_135] : memref<3x2x32xf32, #tpu.memory_space<vmem>>, vector<3x2x32xf32>
      tpu.vector_store %arg10[%c0_133, %c0_134, %c0_135], %565 {strides = array<i32>} : memref<3x2x32xf32, #tpu.memory_space<vmem>>, vector<3x2x32xf32>,
      %c0_136 = arith.constant 0 : index
      %c0_137 = arith.constant 0 : index
      %c0_138 = arith.constant 0 : index
      %567 = vector.load %arg6[%c0_136, %c0_137, %c0_138] : memref<3x2x32xf32, #tpu.memory_space<vmem>>, vector<3x2x32xf32>
      %c0_139 = arith.constant 0 : index
      %c0_140 = arith.constant 0 : index
      %c0_141 = arith.constant 0 : index
      %568 = vector.load %arg11[%c0_139, %c0_140, %c0_141] : memref<3x2x32xf32, #tpu.memory_space<vmem>>, vector<3x2x32xf32>
      tpu.vector_store %arg11[%c0_139, %c0_140, %c0_141], %567 {strides = array<i32>} : memref<3x2x32xf32, #tpu.memory_space<vmem>>, vector<3x2x32xf32>,
    } else {
    }
    %c0 = arith.constant 0 : index
    %c0_1 = arith.constant 0 : index
    %3 = vector.load %arg2[%c0, %c0_1] : memref<32x128xf32, #tpu.memory_space<vmem>>, vector<32x128xf32>
    %c0_2 = arith.constant 0 : index
    %c0_3 = arith.constant 0 : index
    %c0_4 = arith.constant 0 : index
    %4 = vector.load %arg3[%c0_2, %c0_3, %c0_4] : memref<2x64x128xf32, #tpu.memory_space<vmem>>, vector<1x64x128xf32>
    %5 = vector.shape_cast %4 : vector<1x64x128xf32> to vector<64x128xf32>
    %c1 = arith.constant 1 : index
    %c0_5 = arith.constant 0 : index
    %c0_6 = arith.constant 0 : index
    %6 = vector.load %arg3[%c1, %c0_5, %c0_6] : memref<2x64x128xf32, #tpu.memory_space<vmem>>, vector<1x64x128xf32>
    %7 = vector.shape_cast %6 : vector<1x64x128xf32> to vector<64x128xf32>
    %c0_7 = arith.constant 0 : index
    %c0_8 = arith.constant 0 : index
    %c0_9 = arith.constant 0 : index
    %8 = vector.load %arg4[%c0_7, %c0_8, %c0_9] : memref<2x1x128xf32, #tpu.memory_space<vmem>>, vector<1x1x128xf32>
    %9 = vector.shape_cast %8 : vector<1x1x128xf32> to vector<1x128xf32>
    %c1_10 = arith.constant 1 : index
    %c0_11 = arith.constant 0 : index
    %c0_12 = arith.constant 0 : index
    %10 = vector.load %arg4[%c1_10, %c0_11, %c0_12] : memref<2x1x128xf32, #tpu.memory_space<vmem>>, vector<1x1x128xf32>
    %11 = vector.shape_cast %10 : vector<1x1x128xf32> to vector<1x128xf32>
    %c0_13 = arith.constant 0 : index
    %c0_14 = arith.constant 0 : index
    %c0_15 = arith.constant 0 : index
    %12 = vector.load %arg10[%c0_13, %c0_14, %c0_15] : memref<3x2x32xf32, #tpu.memory_space<vmem>>, vector<1x2x32xf32>
    %13 = vector.shape_cast %12 : vector<1x2x32xf32> to vector<2x32xf32>
    %c0_16 = arith.constant 0 : index
    %c0_17 = arith.constant 0 : index
    %c0_18 = arith.constant 0 : index
    %14 = vector.load %arg11[%c0_16, %c0_17, %c0_18] : memref<3x2x32xf32, #tpu.memory_space<vmem>>, vector<1x2x32xf32>
    %15 = vector.shape_cast %14 : vector<1x2x32xf32> to vector<2x32xf32>
    %c1_19 = arith.constant 1 : index
    %c0_20 = arith.constant 0 : index
    %c0_21 = arith.constant 0 : index
    %16 = vector.load %arg10[%c1_19, %c0_20, %c0_21] : memref<3x2x32xf32, #tpu.memory_space<vmem>>, vector<1x2x32xf32>
    %17 = vector.shape_cast %16 : vector<1x2x32xf32> to vector<2x32xf32>
    %c1_22 = arith.constant 1 : index
    %c0_23 = arith.constant 0 : index
    %c0_24 = arith.constant 0 : index
    %18 = vector.load %arg11[%c1_22, %c0_23, %c0_24] : memref<3x2x32xf32, #tpu.memory_space<vmem>>, vector<1x2x32xf32>
    %19 = vector.shape_cast %18 : vector<1x2x32xf32> to vector<2x32xf32>
    %c2 = arith.constant 2 : index
    %c0_25 = arith.constant 0 : index
    %c0_26 = arith.constant 0 : index
    %20 = vector.load %arg10[%c2, %c0_25, %c0_26] : memref<3x2x32xf32, #tpu.memory_space<vmem>>, vector<1x2x32xf32>
    %21 = vector.shape_cast %20 : vector<1x2x32xf32> to vector<2x32xf32>
    %c2_27 = arith.constant 2 : index
    %c0_28 = arith.constant 0 : index
    %c0_29 = arith.constant 0 : index
    %22 = vector.load %arg11[%c2_27, %c0_28, %c0_29] : memref<3x2x32xf32, #tpu.memory_space<vmem>>, vector<1x2x32xf32>
    %23 = vector.shape_cast %22 : vector<1x2x32xf32> to vector<2x32xf32>
    %c0_i32_30 = arith.constant 0 : i32
    %24 = arith.index_cast %c0_i32_30 : i32 to index
    %c0_31 = arith.constant 0 : index
    %c0_32 = arith.constant 0 : index
    %25 = vector.load %arg1[%24, %c0_31, %c0_32] : memref<8x2x128xf32, #tpu.memory_space<vmem>>, vector<1x2x128xf32>
    %26 = vector.shape_cast %25 : vector<1x2x128xf32> to vector<2x128xf32>
    %cst = arith.constant dense<0.000000e+00> : vector<2x128xf32>
    %27 = tpu.matmul %13, %3, %cst {dimension_numbers = #tpu.dot_dimension_numbers<[1], [0], [0], [1], [0, 0, 1, 1], [], []>} : vector<2x32xf32>, vector<32x128xf32>, vector<2x128xf32> -> vector<2x128xf32>
    %28 = arith.addf %26, %27 : vector<2x128xf32>
    %29 = vector.extract_strided_slice %28 {offsets = [0, 0], sizes = [2, 96], strides = [1, 1]} : vector<2x128xf32> to vector<2x96xf32>
    %30 = arith.negf %29 : vector<2x96xf32>
    %31 = math.exp %30 : vector<2x96xf32>
    %cst_33 = arith.constant 1.000000e+00 : f32
    %32 = vector.broadcast %cst_33 : f32 to vector<2x96xf32>
    %33 = arith.addf %32, %31 : vector<2x96xf32>
    %34 = arith.divf %32, %33 : vector<2x96xf32>
    %35 = vector.extract_strided_slice %28 {offsets = [0, 96], sizes = [2, 32], strides = [1, 1]} : vector<2x128xf32> to vector<2x32xf32>
    %36 = math.tanh %35 : vector<2x32xf32>
    %37 = vector.extract_strided_slice %34 {offsets = [0, 0], sizes = [2, 32], strides = [1, 1]} : vector<2x96xf32> to vector<2x32xf32>
    %38 = vector.extract_strided_slice %34 {offsets = [0, 32], sizes = [2, 32], strides = [1, 1]} : vector<2x96xf32> to vector<2x32xf32>
    %39 = vector.extract_strided_slice %34 {offsets = [0, 64], sizes = [2, 32], strides = [1, 1]} : vector<2x96xf32> to vector<2x32xf32>
    %40 = arith.mulf %38, %15 : vector<2x32xf32>
    %41 = arith.mulf %37, %36 : vector<2x32xf32>
    %42 = arith.addf %40, %41 : vector<2x32xf32>
    %43 = math.tanh %42 : vector<2x32xf32>
    %44 = arith.mulf %39, %43 : vector<2x32xf32>
    %45 = tpu.concatenate %44, %17 in 1 : vector<2x32xf32>, vector<2x32xf32> -> vector<2x64xf32>
    %cst_34 = arith.constant dense<0.000000e+00> : vector<2x128xf32>
    %46 = tpu.matmul %45, %5, %cst_34 {dimension_numbers = #tpu.dot_dimension_numbers<[1], [0], [0], [1], [0, 0, 1, 1], [], []>} : vector<2x64xf32>, vector<64x128xf32>, vector<2x128xf32> -> vector<2x128xf32>
    %47 = vector.broadcast %9 : vector<1x128xf32> to vector<2x128xf32>
    %48 = arith.addf %46, %47 : vector<2x128xf32>
    %49 = vector.extract_strided_slice %48 {offsets = [0, 0], sizes = [2, 96], strides = [1, 1]} : vector<2x128xf32> to vector<2x96xf32>
    %50 = arith.negf %49 : vector<2x96xf32>
    %51 = math.exp %50 : vector<2x96xf32>
    %cst_35 = arith.constant 1.000000e+00 : f32
    %52 = vector.broadcast %cst_35 : f32 to vector<2x96xf32>
    %53 = arith.addf %52, %51 : vector<2x96xf32>
    %54 = arith.divf %52, %53 : vector<2x96xf32>
    %55 = vector.extract_strided_slice %48 {offsets = [0, 96], sizes = [2, 32], strides = [1, 1]} : vector<2x128xf32> to vector<2x32xf32>
    %56 = math.tanh %55 : vector<2x32xf32>
    %57 = vector.extract_strided_slice %54 {offsets = [0, 0], sizes = [2, 32], strides = [1, 1]} : vector<2x96xf32> to vector<2x32xf32>
    %58 = vector.extract_strided_slice %54 {offsets = [0, 32], sizes = [2, 32], strides = [1, 1]} : vector<2x96xf32> to vector<2x32xf32>
    %59 = vector.extract_strided_slice %54 {offsets = [0, 64], sizes = [2, 32], strides = [1, 1]} : vector<2x96xf32> to vector<2x32xf32>
    %60 = arith.mulf %58, %19 : vector<2x32xf32>
    %61 = arith.mulf %57, %56 : vector<2x32xf32>
    %62 = arith.addf %60, %61 : vector<2x32xf32>
    %63 = math.tanh %62 : vector<2x32xf32>
    %64 = arith.mulf %59, %63 : vector<2x32xf32>
    %65 = tpu.concatenate %64, %21 in 1 : vector<2x32xf32>, vector<2x32xf32> -> vector<2x64xf32>
    %cst_36 = arith.constant dense<0.000000e+00> : vector<2x128xf32>
    %66 = tpu.matmul %65, %7, %cst_36 {dimension_numbers = #tpu.dot_dimension_numbers<[1], [0], [0], [1], [0, 0, 1, 1], [], []>} : vector<2x64xf32>, vector<64x128xf32>, vector<2x128xf32> -> vector<2x128xf32>
    %67 = vector.broadcast %11 : vector<1x128xf32> to vector<2x128xf32>
    %68 = arith.addf %66, %67 : vector<2x128xf32>
    %69 = vector.extract_strided_slice %68 {offsets = [0, 0], sizes = [2, 96], strides = [1, 1]} : vector<2x128xf32> to vector<2x96xf32>
    %70 = arith.negf %69 : vector<2x96xf32>
    %71 = math.exp %70 : vector<2x96xf32>
    %cst_37 = arith.constant 1.000000e+00 : f32
    %72 = vector.broadcast %cst_37 : f32 to vector<2x96xf32>
    %73 = arith.addf %72, %71 : vector<2x96xf32>
    %74 = arith.divf %72, %73 : vector<2x96xf32>
    %75 = vector.extract_strided_slice %68 {offsets = [0, 96], sizes = [2, 32], strides = [1, 1]} : vector<2x128xf32> to vector<2x32xf32>
    %76 = math.tanh %75 : vector<2x32xf32>
    %77 = vector.extract_strided_slice %74 {offsets = [0, 0], sizes = [2, 32], strides = [1, 1]} : vector<2x96xf32> to vector<2x32xf32>
    %78 = vector.extract_strided_slice %74 {offsets = [0, 32], sizes = [2, 32], strides = [1, 1]} : vector<2x96xf32> to vector<2x32xf32>
    %79 = vector.extract_strided_slice %74 {offsets = [0, 64], sizes = [2, 32], strides = [1, 1]} : vector<2x96xf32> to vector<2x32xf32>
    %80 = arith.mulf %78, %23 : vector<2x32xf32>
    %81 = arith.mulf %77, %76 : vector<2x32xf32>
    %82 = arith.addf %80, %81 : vector<2x32xf32>
    %83 = math.tanh %82 : vector<2x32xf32>
    %84 = arith.mulf %79, %83 : vector<2x32xf32>
    %85 = arith.index_cast %c0_i32_30 : i32 to index
    %c0_38 = arith.constant 0 : index
    %c0_39 = arith.constant 0 : index
    %86 = vector.load %arg7[%85, %c0_38, %c0_39] : memref<8x2x32xf32, #tpu.memory_space<vmem>>, vector<1x2x32xf32>
    %87 = vector.shape_cast %86 : vector<1x2x32xf32> to vector<2x32xf32>
    %88 = vector.shape_cast %84 : vector<2x32xf32> to vector<1x2x32xf32>
    tpu.vector_store %arg7[%85, %c0_38, %c0_39], %88 {strides = array<i32>} : memref<8x2x32xf32, #tpu.memory_space<vmem>>, vector<1x2x32xf32>,
    %c1_i32 = arith.constant 1 : i32
    %89 = arith.index_cast %c1_i32 : i32 to index
    %c0_40 = arith.constant 0 : index
    %c0_41 = arith.constant 0 : index
    %90 = vector.load %arg1[%89, %c0_40, %c0_41] : memref<8x2x128xf32, #tpu.memory_space<vmem>>, vector<1x2x128xf32>
    %91 = vector.shape_cast %90 : vector<1x2x128xf32> to vector<2x128xf32>
    %cst_42 = arith.constant dense<0.000000e+00> : vector<2x128xf32>
    %92 = tpu.matmul %44, %3, %cst_42 {dimension_numbers = #tpu.dot_dimension_numbers<[1], [0], [0], [1], [0, 0, 1, 1], [], []>} : vector<2x32xf32>, vector<32x128xf32>, vector<2x128xf32> -> vector<2x128xf32>
    %93 = arith.addf %91, %92 : vector<2x128xf32>
    %94 = vector.extract_strided_slice %93 {offsets = [0, 0], sizes = [2, 96], strides = [1, 1]} : vector<2x128xf32> to vector<2x96xf32>
    %95 = arith.negf %94 : vector<2x96xf32>
    %96 = math.exp %95 : vector<2x96xf32>
    %cst_43 = arith.constant 1.000000e+00 : f32
    %97 = vector.broadcast %cst_43 : f32 to vector<2x96xf32>
    %98 = arith.addf %97, %96 : vector<2x96xf32>
    %99 = arith.divf %97, %98 : vector<2x96xf32>
    %100 = vector.extract_strided_slice %93 {offsets = [0, 96], sizes = [2, 32], strides = [1, 1]} : vector<2x128xf32> to vector<2x32xf32>
    %101 = math.tanh %100 : vector<2x32xf32>
    %102 = vector.extract_strided_slice %99 {offsets = [0, 0], sizes = [2, 32], strides = [1, 1]} : vector<2x96xf32> to vector<2x32xf32>
    %103 = vector.extract_strided_slice %99 {offsets = [0, 32], sizes = [2, 32], strides = [1, 1]} : vector<2x96xf32> to vector<2x32xf32>
    %104 = vector.extract_strided_slice %99 {offsets = [0, 64], sizes = [2, 32], strides = [1, 1]} : vector<2x96xf32> to vector<2x32xf32>
    %105 = arith.mulf %103, %42 : vector<2x32xf32>
    %106 = arith.mulf %102, %101 : vector<2x32xf32>
    %107 = arith.addf %105, %106 : vector<2x32xf32>
    %108 = math.tanh %107 : vector<2x32xf32>
    %109 = arith.mulf %104, %108 : vector<2x32xf32>
    %110 = tpu.concatenate %109, %64 in 1 : vector<2x32xf32>, vector<2x32xf32> -> vector<2x64xf32>
    %cst_44 = arith.constant dense<0.000000e+00> : vector<2x128xf32>
    %111 = tpu.matmul %110, %5, %cst_44 {dimension_numbers = #tpu.dot_dimension_numbers<[1], [0], [0], [1], [0, 0, 1, 1], [], []>} : vector<2x64xf32>, vector<64x128xf32>, vector<2x128xf32> -> vector<2x128xf32>
    %112 = vector.broadcast %9 : vector<1x128xf32> to vector<2x128xf32>
    %113 = arith.addf %111, %112 : vector<2x128xf32>
    %114 = vector.extract_strided_slice %113 {offsets = [0, 0], sizes = [2, 96], strides = [1, 1]} : vector<2x128xf32> to vector<2x96xf32>
    %115 = arith.negf %114 : vector<2x96xf32>
    %116 = math.exp %115 : vector<2x96xf32>
    %cst_45 = arith.constant 1.000000e+00 : f32
    %117 = vector.broadcast %cst_45 : f32 to vector<2x96xf32>
    %118 = arith.addf %117, %116 : vector<2x96xf32>
    %119 = arith.divf %117, %118 : vector<2x96xf32>
    %120 = vector.extract_strided_slice %113 {offsets = [0, 96], sizes = [2, 32], strides = [1, 1]} : vector<2x128xf32> to vector<2x32xf32>
    %121 = math.tanh %120 : vector<2x32xf32>
    %122 = vector.extract_strided_slice %119 {offsets = [0, 0], sizes = [2, 32], strides = [1, 1]} : vector<2x96xf32> to vector<2x32xf32>
    %123 = vector.extract_strided_slice %119 {offsets = [0, 32], sizes = [2, 32], strides = [1, 1]} : vector<2x96xf32> to vector<2x32xf32>
    %124 = vector.extract_strided_slice %119 {offsets = [0, 64], sizes = [2, 32], strides = [1, 1]} : vector<2x96xf32> to vector<2x32xf32>
    %125 = arith.mulf %123, %62 : vector<2x32xf32>
    %126 = arith.mulf %122, %121 : vector<2x32xf32>
    %127 = arith.addf %125, %126 : vector<2x32xf32>
    %128 = math.tanh %127 : vector<2x32xf32>
    %129 = arith.mulf %124, %128 : vector<2x32xf32>
    %130 = tpu.concatenate %129, %84 in 1 : vector<2x32xf32>, vector<2x32xf32> -> vector<2x64xf32>
    %cst_46 = arith.constant dense<0.000000e+00> : vector<2x128xf32>
    %131 = tpu.matmul %130, %7, %cst_46 {dimension_numbers = #tpu.dot_dimension_numbers<[1], [0], [0], [1], [0, 0, 1, 1], [], []>} : vector<2x64xf32>, vector<64x128xf32>, vector<2x128xf32> -> vector<2x128xf32>
    %132 = vector.broadcast %11 : vector<1x128xf32> to vector<2x128xf32>
    %133 = arith.addf %131, %132 : vector<2x128xf32>
    %134 = vector.extract_strided_slice %133 {offsets = [0, 0], sizes = [2, 96], strides = [1, 1]} : vector<2x128xf32> to vector<2x96xf32>
    %135 = arith.negf %134 : vector<2x96xf32>
    %136 = math.exp %135 : vector<2x96xf32>
    %cst_47 = arith.constant 1.000000e+00 : f32
    %137 = vector.broadcast %cst_47 : f32 to vector<2x96xf32>
    %138 = arith.addf %137, %136 : vector<2x96xf32>
    %139 = arith.divf %137, %138 : vector<2x96xf32>
    %140 = vector.extract_strided_slice %133 {offsets = [0, 96], sizes = [2, 32], strides = [1, 1]} : vector<2x128xf32> to vector<2x32xf32>
    %141 = math.tanh %140 : vector<2x32xf32>
    %142 = vector.extract_strided_slice %139 {offsets = [0, 0], sizes = [2, 32], strides = [1, 1]} : vector<2x96xf32> to vector<2x32xf32>
    %143 = vector.extract_strided_slice %139 {offsets = [0, 32], sizes = [2, 32], strides = [1, 1]} : vector<2x96xf32> to vector<2x32xf32>
    %144 = vector.extract_strided_slice %139 {offsets = [0, 64], sizes = [2, 32], strides = [1, 1]} : vector<2x96xf32> to vector<2x32xf32>
    %145 = arith.mulf %143, %82 : vector<2x32xf32>
    %146 = arith.mulf %142, %141 : vector<2x32xf32>
    %147 = arith.addf %145, %146 : vector<2x32xf32>
    %148 = math.tanh %147 : vector<2x32xf32>
    %149 = arith.mulf %144, %148 : vector<2x32xf32>
    %150 = arith.index_cast %c1_i32 : i32 to index
    %c0_48 = arith.constant 0 : index
    %c0_49 = arith.constant 0 : index
    %151 = vector.load %arg7[%150, %c0_48, %c0_49] : memref<8x2x32xf32, #tpu.memory_space<vmem>>, vector<1x2x32xf32>
    %152 = vector.shape_cast %151 : vector<1x2x32xf32> to vector<2x32xf32>
    %153 = vector.shape_cast %149 : vector<2x32xf32> to vector<1x2x32xf32>
    tpu.vector_store %arg7[%150, %c0_48, %c0_49], %153 {strides = array<i32>} : memref<8x2x32xf32, #tpu.memory_space<vmem>>, vector<1x2x32xf32>,
    %c2_i32 = arith.constant 2 : i32
    %154 = arith.index_cast %c2_i32 : i32 to index
    %c0_50 = arith.constant 0 : index
    %c0_51 = arith.constant 0 : index
    %155 = vector.load %arg1[%154, %c0_50, %c0_51] : memref<8x2x128xf32, #tpu.memory_space<vmem>>, vector<1x2x128xf32>
    %156 = vector.shape_cast %155 : vector<1x2x128xf32> to vector<2x128xf32>
    %cst_52 = arith.constant dense<0.000000e+00> : vector<2x128xf32>
    %157 = tpu.matmul %109, %3, %cst_52 {dimension_numbers = #tpu.dot_dimension_numbers<[1], [0], [0], [1], [0, 0, 1, 1], [], []>} : vector<2x32xf32>, vector<32x128xf32>, vector<2x128xf32> -> vector<2x128xf32>
    %158 = arith.addf %156, %157 : vector<2x128xf32>
    %159 = vector.extract_strided_slice %158 {offsets = [0, 0], sizes = [2, 96], strides = [1, 1]} : vector<2x128xf32> to vector<2x96xf32>
    %160 = arith.negf %159 : vector<2x96xf32>
    %161 = math.exp %160 : vector<2x96xf32>
    %cst_53 = arith.constant 1.000000e+00 : f32
    %162 = vector.broadcast %cst_53 : f32 to vector<2x96xf32>
    %163 = arith.addf %162, %161 : vector<2x96xf32>
    %164 = arith.divf %162, %163 : vector<2x96xf32>
    %165 = vector.extract_strided_slice %158 {offsets = [0, 96], sizes = [2, 32], strides = [1, 1]} : vector<2x128xf32> to vector<2x32xf32>
    %166 = math.tanh %165 : vector<2x32xf32>
    %167 = vector.extract_strided_slice %164 {offsets = [0, 0], sizes = [2, 32], strides = [1, 1]} : vector<2x96xf32> to vector<2x32xf32>
    %168 = vector.extract_strided_slice %164 {offsets = [0, 32], sizes = [2, 32], strides = [1, 1]} : vector<2x96xf32> to vector<2x32xf32>
    %169 = vector.extract_strided_slice %164 {offsets = [0, 64], sizes = [2, 32], strides = [1, 1]} : vector<2x96xf32> to vector<2x32xf32>
    %170 = arith.mulf %168, %107 : vector<2x32xf32>
    %171 = arith.mulf %167, %166 : vector<2x32xf32>
    %172 = arith.addf %170, %171 : vector<2x32xf32>
    %173 = math.tanh %172 : vector<2x32xf32>
    %174 = arith.mulf %169, %173 : vector<2x32xf32>
    %175 = tpu.concatenate %174, %129 in 1 : vector<2x32xf32>, vector<2x32xf32> -> vector<2x64xf32>
    %cst_54 = arith.constant dense<0.000000e+00> : vector<2x128xf32>
    %176 = tpu.matmul %175, %5, %cst_54 {dimension_numbers = #tpu.dot_dimension_numbers<[1], [0], [0], [1], [0, 0, 1, 1], [], []>} : vector<2x64xf32>, vector<64x128xf32>, vector<2x128xf32> -> vector<2x128xf32>
    %177 = vector.broadcast %9 : vector<1x128xf32> to vector<2x128xf32>
    %178 = arith.addf %176, %177 : vector<2x128xf32>
    %179 = vector.extract_strided_slice %178 {offsets = [0, 0], sizes = [2, 96], strides = [1, 1]} : vector<2x128xf32> to vector<2x96xf32>
    %180 = arith.negf %179 : vector<2x96xf32>
    %181 = math.exp %180 : vector<2x96xf32>
    %cst_55 = arith.constant 1.000000e+00 : f32
    %182 = vector.broadcast %cst_55 : f32 to vector<2x96xf32>
    %183 = arith.addf %182, %181 : vector<2x96xf32>
    %184 = arith.divf %182, %183 : vector<2x96xf32>
    %185 = vector.extract_strided_slice %178 {offsets = [0, 96], sizes = [2, 32], strides = [1, 1]} : vector<2x128xf32> to vector<2x32xf32>
    %186 = math.tanh %185 : vector<2x32xf32>
    %187 = vector.extract_strided_slice %184 {offsets = [0, 0], sizes = [2, 32], strides = [1, 1]} : vector<2x96xf32> to vector<2x32xf32>
    %188 = vector.extract_strided_slice %184 {offsets = [0, 32], sizes = [2, 32], strides = [1, 1]} : vector<2x96xf32> to vector<2x32xf32>
    %189 = vector.extract_strided_slice %184 {offsets = [0, 64], sizes = [2, 32], strides = [1, 1]} : vector<2x96xf32> to vector<2x32xf32>
    %190 = arith.mulf %188, %127 : vector<2x32xf32>
    %191 = arith.mulf %187, %186 : vector<2x32xf32>
    %192 = arith.addf %190, %191 : vector<2x32xf32>
    %193 = math.tanh %192 : vector<2x32xf32>
    %194 = arith.mulf %189, %193 : vector<2x32xf32>
    %195 = tpu.concatenate %194, %149 in 1 : vector<2x32xf32>, vector<2x32xf32> -> vector<2x64xf32>
    %cst_56 = arith.constant dense<0.000000e+00> : vector<2x128xf32>
    %196 = tpu.matmul %195, %7, %cst_56 {dimension_numbers = #tpu.dot_dimension_numbers<[1], [0], [0], [1], [0, 0, 1, 1], [], []>} : vector<2x64xf32>, vector<64x128xf32>, vector<2x128xf32> -> vector<2x128xf32>
    %197 = vector.broadcast %11 : vector<1x128xf32> to vector<2x128xf32>
    %198 = arith.addf %196, %197 : vector<2x128xf32>
    %199 = vector.extract_strided_slice %198 {offsets = [0, 0], sizes = [2, 96], strides = [1, 1]} : vector<2x128xf32> to vector<2x96xf32>
    %200 = arith.negf %199 : vector<2x96xf32>
    %201 = math.exp %200 : vector<2x96xf32>
    %cst_57 = arith.constant 1.000000e+00 : f32
    %202 = vector.broadcast %cst_57 : f32 to vector<2x96xf32>
    %203 = arith.addf %202, %201 : vector<2x96xf32>
    %204 = arith.divf %202, %203 : vector<2x96xf32>
    %205 = vector.extract_strided_slice %198 {offsets = [0, 96], sizes = [2, 32], strides = [1, 1]} : vector<2x128xf32> to vector<2x32xf32>
    %206 = math.tanh %205 : vector<2x32xf32>
    %207 = vector.extract_strided_slice %204 {offsets = [0, 0], sizes = [2, 32], strides = [1, 1]} : vector<2x96xf32> to vector<2x32xf32>
    %208 = vector.extract_strided_slice %204 {offsets = [0, 32], sizes = [2, 32], strides = [1, 1]} : vector<2x96xf32> to vector<2x32xf32>
    %209 = vector.extract_strided_slice %204 {offsets = [0, 64], sizes = [2, 32], strides = [1, 1]} : vector<2x96xf32> to vector<2x32xf32>
    %210 = arith.mulf %208, %147 : vector<2x32xf32>
    %211 = arith.mulf %207, %206 : vector<2x32xf32>
    %212 = arith.addf %210, %211 : vector<2x32xf32>
    %213 = math.tanh %212 : vector<2x32xf32>
    %214 = arith.mulf %209, %213 : vector<2x32xf32>
    %215 = arith.index_cast %c2_i32 : i32 to index
    %c0_58 = arith.constant 0 : index
    %c0_59 = arith.constant 0 : index
    %216 = vector.load %arg7[%215, %c0_58, %c0_59] : memref<8x2x32xf32, #tpu.memory_space<vmem>>, vector<1x2x32xf32>
    %217 = vector.shape_cast %216 : vector<1x2x32xf32> to vector<2x32xf32>
    %218 = vector.shape_cast %214 : vector<2x32xf32> to vector<1x2x32xf32>
    tpu.vector_store %arg7[%215, %c0_58, %c0_59], %218 {strides = array<i32>} : memref<8x2x32xf32, #tpu.memory_space<vmem>>, vector<1x2x32xf32>,
    %c3_i32 = arith.constant 3 : i32
    %219 = arith.index_cast %c3_i32 : i32 to index
    %c0_60 = arith.constant 0 : index
    %c0_61 = arith.constant 0 : index
    %220 = vector.load %arg1[%219, %c0_60, %c0_61] : memref<8x2x128xf32, #tpu.memory_space<vmem>>, vector<1x2x128xf32>
    %221 = vector.shape_cast %220 : vector<1x2x128xf32> to vector<2x128xf32>
    %cst_62 = arith.constant dense<0.000000e+00> : vector<2x128xf32>
    %222 = tpu.matmul %174, %3, %cst_62 {dimension_numbers = #tpu.dot_dimension_numbers<[1], [0], [0], [1], [0, 0, 1, 1], [], []>} : vector<2x32xf32>, vector<32x128xf32>, vector<2x128xf32> -> vector<2x128xf32>
    %223 = arith.addf %221, %222 : vector<2x128xf32>
    %224 = vector.extract_strided_slice %223 {offsets = [0, 0], sizes = [2, 96], strides = [1, 1]} : vector<2x128xf32> to vector<2x96xf32>
    %225 = arith.negf %224 : vector<2x96xf32>
    %226 = math.exp %225 : vector<2x96xf32>
    %cst_63 = arith.constant 1.000000e+00 : f32
    %227 = vector.broadcast %cst_63 : f32 to vector<2x96xf32>
    %228 = arith.addf %227, %226 : vector<2x96xf32>
    %229 = arith.divf %227, %228 : vector<2x96xf32>
    %230 = vector.extract_strided_slice %223 {offsets = [0, 96], sizes = [2, 32], strides = [1, 1]} : vector<2x128xf32> to vector<2x32xf32>
    %231 = math.tanh %230 : vector<2x32xf32>
    %232 = vector.extract_strided_slice %229 {offsets = [0, 0], sizes = [2, 32], strides = [1, 1]} : vector<2x96xf32> to vector<2x32xf32>
    %233 = vector.extract_strided_slice %229 {offsets = [0, 32], sizes = [2, 32], strides = [1, 1]} : vector<2x96xf32> to vector<2x32xf32>
    %234 = vector.extract_strided_slice %229 {offsets = [0, 64], sizes = [2, 32], strides = [1, 1]} : vector<2x96xf32> to vector<2x32xf32>
    %235 = arith.mulf %233, %172 : vector<2x32xf32>
    %236 = arith.mulf %232, %231 : vector<2x32xf32>
    %237 = arith.addf %235, %236 : vector<2x32xf32>
    %238 = math.tanh %237 : vector<2x32xf32>
    %239 = arith.mulf %234, %238 : vector<2x32xf32>
    %240 = tpu.concatenate %239, %194 in 1 : vector<2x32xf32>, vector<2x32xf32> -> vector<2x64xf32>
    %cst_64 = arith.constant dense<0.000000e+00> : vector<2x128xf32>
    %241 = tpu.matmul %240, %5, %cst_64 {dimension_numbers = #tpu.dot_dimension_numbers<[1], [0], [0], [1], [0, 0, 1, 1], [], []>} : vector<2x64xf32>, vector<64x128xf32>, vector<2x128xf32> -> vector<2x128xf32>
    %242 = vector.broadcast %9 : vector<1x128xf32> to vector<2x128xf32>
    %243 = arith.addf %241, %242 : vector<2x128xf32>
    %244 = vector.extract_strided_slice %243 {offsets = [0, 0], sizes = [2, 96], strides = [1, 1]} : vector<2x128xf32> to vector<2x96xf32>
    %245 = arith.negf %244 : vector<2x96xf32>
    %246 = math.exp %245 : vector<2x96xf32>
    %cst_65 = arith.constant 1.000000e+00 : f32
    %247 = vector.broadcast %cst_65 : f32 to vector<2x96xf32>
    %248 = arith.addf %247, %246 : vector<2x96xf32>
    %249 = arith.divf %247, %248 : vector<2x96xf32>
    %250 = vector.extract_strided_slice %243 {offsets = [0, 96], sizes = [2, 32], strides = [1, 1]} : vector<2x128xf32> to vector<2x32xf32>
    %251 = math.tanh %250 : vector<2x32xf32>
    %252 = vector.extract_strided_slice %249 {offsets = [0, 0], sizes = [2, 32], strides = [1, 1]} : vector<2x96xf32> to vector<2x32xf32>
    %253 = vector.extract_strided_slice %249 {offsets = [0, 32], sizes = [2, 32], strides = [1, 1]} : vector<2x96xf32> to vector<2x32xf32>
    %254 = vector.extract_strided_slice %249 {offsets = [0, 64], sizes = [2, 32], strides = [1, 1]} : vector<2x96xf32> to vector<2x32xf32>
    %255 = arith.mulf %253, %192 : vector<2x32xf32>
    %256 = arith.mulf %252, %251 : vector<2x32xf32>
    %257 = arith.addf %255, %256 : vector<2x32xf32>
    %258 = math.tanh %257 : vector<2x32xf32>
    %259 = arith.mulf %254, %258 : vector<2x32xf32>
    %260 = tpu.concatenate %259, %214 in 1 : vector<2x32xf32>, vector<2x32xf32> -> vector<2x64xf32>
    %cst_66 = arith.constant dense<0.000000e+00> : vector<2x128xf32>
    %261 = tpu.matmul %260, %7, %cst_66 {dimension_numbers = #tpu.dot_dimension_numbers<[1], [0], [0], [1], [0, 0, 1, 1], [], []>} : vector<2x64xf32>, vector<64x128xf32>, vector<2x128xf32> -> vector<2x128xf32>
    %262 = vector.broadcast %11 : vector<1x128xf32> to vector<2x128xf32>
    %263 = arith.addf %261, %262 : vector<2x128xf32>
    %264 = vector.extract_strided_slice %263 {offsets = [0, 0], sizes = [2, 96], strides = [1, 1]} : vector<2x128xf32> to vector<2x96xf32>
    %265 = arith.negf %264 : vector<2x96xf32>
    %266 = math.exp %265 : vector<2x96xf32>
    %cst_67 = arith.constant 1.000000e+00 : f32
    %267 = vector.broadcast %cst_67 : f32 to vector<2x96xf32>
    %268 = arith.addf %267, %266 : vector<2x96xf32>
    %269 = arith.divf %267, %268 : vector<2x96xf32>
    %270 = vector.extract_strided_slice %263 {offsets = [0, 96], sizes = [2, 32], strides = [1, 1]} : vector<2x128xf32> to vector<2x32xf32>
    %271 = math.tanh %270 : vector<2x32xf32>
    %272 = vector.extract_strided_slice %269 {offsets = [0, 0], sizes = [2, 32], strides = [1, 1]} : vector<2x96xf32> to vector<2x32xf32>
    %273 = vector.extract_strided_slice %269 {offsets = [0, 32], sizes = [2, 32], strides = [1, 1]} : vector<2x96xf32> to vector<2x32xf32>
    %274 = vector.extract_strided_slice %269 {offsets = [0, 64], sizes = [2, 32], strides = [1, 1]} : vector<2x96xf32> to vector<2x32xf32>
    %275 = arith.mulf %273, %212 : vector<2x32xf32>
    %276 = arith.mulf %272, %271 : vector<2x32xf32>
    %277 = arith.addf %275, %276 : vector<2x32xf32>
    %278 = math.tanh %277 : vector<2x32xf32>
    %279 = arith.mulf %274, %278 : vector<2x32xf32>
    %280 = arith.index_cast %c3_i32 : i32 to index
    %c0_68 = arith.constant 0 : index
    %c0_69 = arith.constant 0 : index
    %281 = vector.load %arg7[%280, %c0_68, %c0_69] : memref<8x2x32xf32, #tpu.memory_space<vmem>>, vector<1x2x32xf32>
    %282 = vector.shape_cast %281 : vector<1x2x32xf32> to vector<2x32xf32>
    %283 = vector.shape_cast %279 : vector<2x32xf32> to vector<1x2x32xf32>
    tpu.vector_store %arg7[%280, %c0_68, %c0_69], %283 {strides = array<i32>} : memref<8x2x32xf32, #tpu.memory_space<vmem>>, vector<1x2x32xf32>,
    %c4_i32 = arith.constant 4 : i32
    %284 = arith.index_cast %c4_i32 : i32 to index
    %c0_70 = arith.constant 0 : index
    %c0_71 = arith.constant 0 : index
    %285 = vector.load %arg1[%284, %c0_70, %c0_71] : memref<8x2x128xf32, #tpu.memory_space<vmem>>, vector<1x2x128xf32>
    %286 = vector.shape_cast %285 : vector<1x2x128xf32> to vector<2x128xf32>
    %cst_72 = arith.constant dense<0.000000e+00> : vector<2x128xf32>
    %287 = tpu.matmul %239, %3, %cst_72 {dimension_numbers = #tpu.dot_dimension_numbers<[1], [0], [0], [1], [0, 0, 1, 1], [], []>} : vector<2x32xf32>, vector<32x128xf32>, vector<2x128xf32> -> vector<2x128xf32>
    %288 = arith.addf %286, %287 : vector<2x128xf32>
    %289 = vector.extract_strided_slice %288 {offsets = [0, 0], sizes = [2, 96], strides = [1, 1]} : vector<2x128xf32> to vector<2x96xf32>
    %290 = arith.negf %289 : vector<2x96xf32>
    %291 = math.exp %290 : vector<2x96xf32>
    %cst_73 = arith.constant 1.000000e+00 : f32
    %292 = vector.broadcast %cst_73 : f32 to vector<2x96xf32>
    %293 = arith.addf %292, %291 : vector<2x96xf32>
    %294 = arith.divf %292, %293 : vector<2x96xf32>
    %295 = vector.extract_strided_slice %288 {offsets = [0, 96], sizes = [2, 32], strides = [1, 1]} : vector<2x128xf32> to vector<2x32xf32>
    %296 = math.tanh %295 : vector<2x32xf32>
    %297 = vector.extract_strided_slice %294 {offsets = [0, 0], sizes = [2, 32], strides = [1, 1]} : vector<2x96xf32> to vector<2x32xf32>
    %298 = vector.extract_strided_slice %294 {offsets = [0, 32], sizes = [2, 32], strides = [1, 1]} : vector<2x96xf32> to vector<2x32xf32>
    %299 = vector.extract_strided_slice %294 {offsets = [0, 64], sizes = [2, 32], strides = [1, 1]} : vector<2x96xf32> to vector<2x32xf32>
    %300 = arith.mulf %298, %237 : vector<2x32xf32>
    %301 = arith.mulf %297, %296 : vector<2x32xf32>
    %302 = arith.addf %300, %301 : vector<2x32xf32>
    %303 = math.tanh %302 : vector<2x32xf32>
    %304 = arith.mulf %299, %303 : vector<2x32xf32>
    %305 = tpu.concatenate %304, %259 in 1 : vector<2x32xf32>, vector<2x32xf32> -> vector<2x64xf32>
    %cst_74 = arith.constant dense<0.000000e+00> : vector<2x128xf32>
    %306 = tpu.matmul %305, %5, %cst_74 {dimension_numbers = #tpu.dot_dimension_numbers<[1], [0], [0], [1], [0, 0, 1, 1], [], []>} : vector<2x64xf32>, vector<64x128xf32>, vector<2x128xf32> -> vector<2x128xf32>
    %307 = vector.broadcast %9 : vector<1x128xf32> to vector<2x128xf32>
    %308 = arith.addf %306, %307 : vector<2x128xf32>
    %309 = vector.extract_strided_slice %308 {offsets = [0, 0], sizes = [2, 96], strides = [1, 1]} : vector<2x128xf32> to vector<2x96xf32>
    %310 = arith.negf %309 : vector<2x96xf32>
    %311 = math.exp %310 : vector<2x96xf32>
    %cst_75 = arith.constant 1.000000e+00 : f32
    %312 = vector.broadcast %cst_75 : f32 to vector<2x96xf32>
    %313 = arith.addf %312, %311 : vector<2x96xf32>
    %314 = arith.divf %312, %313 : vector<2x96xf32>
    %315 = vector.extract_strided_slice %308 {offsets = [0, 96], sizes = [2, 32], strides = [1, 1]} : vector<2x128xf32> to vector<2x32xf32>
    %316 = math.tanh %315 : vector<2x32xf32>
    %317 = vector.extract_strided_slice %314 {offsets = [0, 0], sizes = [2, 32], strides = [1, 1]} : vector<2x96xf32> to vector<2x32xf32>
    %318 = vector.extract_strided_slice %314 {offsets = [0, 32], sizes = [2, 32], strides = [1, 1]} : vector<2x96xf32> to vector<2x32xf32>
    %319 = vector.extract_strided_slice %314 {offsets = [0, 64], sizes = [2, 32], strides = [1, 1]} : vector<2x96xf32> to vector<2x32xf32>
    %320 = arith.mulf %318, %257 : vector<2x32xf32>
    %321 = arith.mulf %317, %316 : vector<2x32xf32>
    %322 = arith.addf %320, %321 : vector<2x32xf32>
    %323 = math.tanh %322 : vector<2x32xf32>
    %324 = arith.mulf %319, %323 : vector<2x32xf32>
    %325 = tpu.concatenate %324, %279 in 1 : vector<2x32xf32>, vector<2x32xf32> -> vector<2x64xf32>
    %cst_76 = arith.constant dense<0.000000e+00> : vector<2x128xf32>
    %326 = tpu.matmul %325, %7, %cst_76 {dimension_numbers = #tpu.dot_dimension_numbers<[1], [0], [0], [1], [0, 0, 1, 1], [], []>} : vector<2x64xf32>, vector<64x128xf32>, vector<2x128xf32> -> vector<2x128xf32>
    %327 = vector.broadcast %11 : vector<1x128xf32> to vector<2x128xf32>
    %328 = arith.addf %326, %327 : vector<2x128xf32>
    %329 = vector.extract_strided_slice %328 {offsets = [0, 0], sizes = [2, 96], strides = [1, 1]} : vector<2x128xf32> to vector<2x96xf32>
    %330 = arith.negf %329 : vector<2x96xf32>
    %331 = math.exp %330 : vector<2x96xf32>
    %cst_77 = arith.constant 1.000000e+00 : f32
    %332 = vector.broadcast %cst_77 : f32 to vector<2x96xf32>
    %333 = arith.addf %332, %331 : vector<2x96xf32>
    %334 = arith.divf %332, %333 : vector<2x96xf32>
    %335 = vector.extract_strided_slice %328 {offsets = [0, 96], sizes = [2, 32], strides = [1, 1]} : vector<2x128xf32> to vector<2x32xf32>
    %336 = math.tanh %335 : vector<2x32xf32>
    %337 = vector.extract_strided_slice %334 {offsets = [0, 0], sizes = [2, 32], strides = [1, 1]} : vector<2x96xf32> to vector<2x32xf32>
    %338 = vector.extract_strided_slice %334 {offsets = [0, 32], sizes = [2, 32], strides = [1, 1]} : vector<2x96xf32> to vector<2x32xf32>
    %339 = vector.extract_strided_slice %334 {offsets = [0, 64], sizes = [2, 32], strides = [1, 1]} : vector<2x96xf32> to vector<2x32xf32>
    %340 = arith.mulf %338, %277 : vector<2x32xf32>
    %341 = arith.mulf %337, %336 : vector<2x32xf32>
    %342 = arith.addf %340, %341 : vector<2x32xf32>
    %343 = math.tanh %342 : vector<2x32xf32>
    %344 = arith.mulf %339, %343 : vector<2x32xf32>
    %345 = arith.index_cast %c4_i32 : i32 to index
    %c0_78 = arith.constant 0 : index
    %c0_79 = arith.constant 0 : index
    %346 = vector.load %arg7[%345, %c0_78, %c0_79] : memref<8x2x32xf32, #tpu.memory_space<vmem>>, vector<1x2x32xf32>
    %347 = vector.shape_cast %346 : vector<1x2x32xf32> to vector<2x32xf32>
    %348 = vector.shape_cast %344 : vector<2x32xf32> to vector<1x2x32xf32>
    tpu.vector_store %arg7[%345, %c0_78, %c0_79], %348 {strides = array<i32>} : memref<8x2x32xf32, #tpu.memory_space<vmem>>, vector<1x2x32xf32>,
    %c5_i32 = arith.constant 5 : i32
    %349 = arith.index_cast %c5_i32 : i32 to index
    %c0_80 = arith.constant 0 : index
    %c0_81 = arith.constant 0 : index
    %350 = vector.load %arg1[%349, %c0_80, %c0_81] : memref<8x2x128xf32, #tpu.memory_space<vmem>>, vector<1x2x128xf32>
    %351 = vector.shape_cast %350 : vector<1x2x128xf32> to vector<2x128xf32>
    %cst_82 = arith.constant dense<0.000000e+00> : vector<2x128xf32>
    %352 = tpu.matmul %304, %3, %cst_82 {dimension_numbers = #tpu.dot_dimension_numbers<[1], [0], [0], [1], [0, 0, 1, 1], [], []>} : vector<2x32xf32>, vector<32x128xf32>, vector<2x128xf32> -> vector<2x128xf32>
    %353 = arith.addf %351, %352 : vector<2x128xf32>
    %354 = vector.extract_strided_slice %353 {offsets = [0, 0], sizes = [2, 96], strides = [1, 1]} : vector<2x128xf32> to vector<2x96xf32>
    %355 = arith.negf %354 : vector<2x96xf32>
    %356 = math.exp %355 : vector<2x96xf32>
    %cst_83 = arith.constant 1.000000e+00 : f32
    %357 = vector.broadcast %cst_83 : f32 to vector<2x96xf32>
    %358 = arith.addf %357, %356 : vector<2x96xf32>
    %359 = arith.divf %357, %358 : vector<2x96xf32>
    %360 = vector.extract_strided_slice %353 {offsets = [0, 96], sizes = [2, 32], strides = [1, 1]} : vector<2x128xf32> to vector<2x32xf32>
    %361 = math.tanh %360 : vector<2x32xf32>
    %362 = vector.extract_strided_slice %359 {offsets = [0, 0], sizes = [2, 32], strides = [1, 1]} : vector<2x96xf32> to vector<2x32xf32>
    %363 = vector.extract_strided_slice %359 {offsets = [0, 32], sizes = [2, 32], strides = [1, 1]} : vector<2x96xf32> to vector<2x32xf32>
    %364 = vector.extract_strided_slice %359 {offsets = [0, 64], sizes = [2, 32], strides = [1, 1]} : vector<2x96xf32> to vector<2x32xf32>
    %365 = arith.mulf %363, %302 : vector<2x32xf32>
    %366 = arith.mulf %362, %361 : vector<2x32xf32>
    %367 = arith.addf %365, %366 : vector<2x32xf32>
    %368 = math.tanh %367 : vector<2x32xf32>
    %369 = arith.mulf %364, %368 : vector<2x32xf32>
    %370 = tpu.concatenate %369, %324 in 1 : vector<2x32xf32>, vector<2x32xf32> -> vector<2x64xf32>
    %cst_84 = arith.constant dense<0.000000e+00> : vector<2x128xf32>
    %371 = tpu.matmul %370, %5, %cst_84 {dimension_numbers = #tpu.dot_dimension_numbers<[1], [0], [0], [1], [0, 0, 1, 1], [], []>} : vector<2x64xf32>, vector<64x128xf32>, vector<2x128xf32> -> vector<2x128xf32>
    %372 = vector.broadcast %9 : vector<1x128xf32> to vector<2x128xf32>
    %373 = arith.addf %371, %372 : vector<2x128xf32>
    %374 = vector.extract_strided_slice %373 {offsets = [0, 0], sizes = [2, 96], strides = [1, 1]} : vector<2x128xf32> to vector<2x96xf32>
    %375 = arith.negf %374 : vector<2x96xf32>
    %376 = math.exp %375 : vector<2x96xf32>
    %cst_85 = arith.constant 1.000000e+00 : f32
    %377 = vector.broadcast %cst_85 : f32 to vector<2x96xf32>
    %378 = arith.addf %377, %376 : vector<2x96xf32>
    %379 = arith.divf %377, %378 : vector<2x96xf32>
    %380 = vector.extract_strided_slice %373 {offsets = [0, 96], sizes = [2, 32], strides = [1, 1]} : vector<2x128xf32> to vector<2x32xf32>
    %381 = math.tanh %380 : vector<2x32xf32>
    %382 = vector.extract_strided_slice %379 {offsets = [0, 0], sizes = [2, 32], strides = [1, 1]} : vector<2x96xf32> to vector<2x32xf32>
    %383 = vector.extract_strided_slice %379 {offsets = [0, 32], sizes = [2, 32], strides = [1, 1]} : vector<2x96xf32> to vector<2x32xf32>
    %384 = vector.extract_strided_slice %379 {offsets = [0, 64], sizes = [2, 32], strides = [1, 1]} : vector<2x96xf32> to vector<2x32xf32>
    %385 = arith.mulf %383, %322 : vector<2x32xf32>
    %386 = arith.mulf %382, %381 : vector<2x32xf32>
    %387 = arith.addf %385, %386 : vector<2x32xf32>
    %388 = math.tanh %387 : vector<2x32xf32>
    %389 = arith.mulf %384, %388 : vector<2x32xf32>
    %390 = tpu.concatenate %389, %344 in 1 : vector<2x32xf32>, vector<2x32xf32> -> vector<2x64xf32>
    %cst_86 = arith.constant dense<0.000000e+00> : vector<2x128xf32>
    %391 = tpu.matmul %390, %7, %cst_86 {dimension_numbers = #tpu.dot_dimension_numbers<[1], [0], [0], [1], [0, 0, 1, 1], [], []>} : vector<2x64xf32>, vector<64x128xf32>, vector<2x128xf32> -> vector<2x128xf32>
    %392 = vector.broadcast %11 : vector<1x128xf32> to vector<2x128xf32>
    %393 = arith.addf %391, %392 : vector<2x128xf32>
    %394 = vector.extract_strided_slice %393 {offsets = [0, 0], sizes = [2, 96], strides = [1, 1]} : vector<2x128xf32> to vector<2x96xf32>
    %395 = arith.negf %394 : vector<2x96xf32>
    %396 = math.exp %395 : vector<2x96xf32>
    %cst_87 = arith.constant 1.000000e+00 : f32
    %397 = vector.broadcast %cst_87 : f32 to vector<2x96xf32>
    %398 = arith.addf %397, %396 : vector<2x96xf32>
    %399 = arith.divf %397, %398 : vector<2x96xf32>
    %400 = vector.extract_strided_slice %393 {offsets = [0, 96], sizes = [2, 32], strides = [1, 1]} : vector<2x128xf32> to vector<2x32xf32>
    %401 = math.tanh %400 : vector<2x32xf32>
    %402 = vector.extract_strided_slice %399 {offsets = [0, 0], sizes = [2, 32], strides = [1, 1]} : vector<2x96xf32> to vector<2x32xf32>
    %403 = vector.extract_strided_slice %399 {offsets = [0, 32], sizes = [2, 32], strides = [1, 1]} : vector<2x96xf32> to vector<2x32xf32>
    %404 = vector.extract_strided_slice %399 {offsets = [0, 64], sizes = [2, 32], strides = [1, 1]} : vector<2x96xf32> to vector<2x32xf32>
    %405 = arith.mulf %403, %342 : vector<2x32xf32>
    %406 = arith.mulf %402, %401 : vector<2x32xf32>
    %407 = arith.addf %405, %406 : vector<2x32xf32>
    %408 = math.tanh %407 : vector<2x32xf32>
    %409 = arith.mulf %404, %408 : vector<2x32xf32>
    %410 = arith.index_cast %c5_i32 : i32 to index
    %c0_88 = arith.constant 0 : index
    %c0_89 = arith.constant 0 : index
    %411 = vector.load %arg7[%410, %c0_88, %c0_89] : memref<8x2x32xf32, #tpu.memory_space<vmem>>, vector<1x2x32xf32>
    %412 = vector.shape_cast %411 : vector<1x2x32xf32> to vector<2x32xf32>
    %413 = vector.shape_cast %409 : vector<2x32xf32> to vector<1x2x32xf32>
    tpu.vector_store %arg7[%410, %c0_88, %c0_89], %413 {strides = array<i32>} : memref<8x2x32xf32, #tpu.memory_space<vmem>>, vector<1x2x32xf32>,
    %c6_i32 = arith.constant 6 : i32
    %414 = arith.index_cast %c6_i32 : i32 to index
    %c0_90 = arith.constant 0 : index
    %c0_91 = arith.constant 0 : index
    %415 = vector.load %arg1[%414, %c0_90, %c0_91] : memref<8x2x128xf32, #tpu.memory_space<vmem>>, vector<1x2x128xf32>
    %416 = vector.shape_cast %415 : vector<1x2x128xf32> to vector<2x128xf32>
    %cst_92 = arith.constant dense<0.000000e+00> : vector<2x128xf32>
    %417 = tpu.matmul %369, %3, %cst_92 {dimension_numbers = #tpu.dot_dimension_numbers<[1], [0], [0], [1], [0, 0, 1, 1], [], []>} : vector<2x32xf32>, vector<32x128xf32>, vector<2x128xf32> -> vector<2x128xf32>
    %418 = arith.addf %416, %417 : vector<2x128xf32>
    %419 = vector.extract_strided_slice %418 {offsets = [0, 0], sizes = [2, 96], strides = [1, 1]} : vector<2x128xf32> to vector<2x96xf32>
    %420 = arith.negf %419 : vector<2x96xf32>
    %421 = math.exp %420 : vector<2x96xf32>
    %cst_93 = arith.constant 1.000000e+00 : f32
    %422 = vector.broadcast %cst_93 : f32 to vector<2x96xf32>
    %423 = arith.addf %422, %421 : vector<2x96xf32>
    %424 = arith.divf %422, %423 : vector<2x96xf32>
    %425 = vector.extract_strided_slice %418 {offsets = [0, 96], sizes = [2, 32], strides = [1, 1]} : vector<2x128xf32> to vector<2x32xf32>
    %426 = math.tanh %425 : vector<2x32xf32>
    %427 = vector.extract_strided_slice %424 {offsets = [0, 0], sizes = [2, 32], strides = [1, 1]} : vector<2x96xf32> to vector<2x32xf32>
    %428 = vector.extract_strided_slice %424 {offsets = [0, 32], sizes = [2, 32], strides = [1, 1]} : vector<2x96xf32> to vector<2x32xf32>
    %429 = vector.extract_strided_slice %424 {offsets = [0, 64], sizes = [2, 32], strides = [1, 1]} : vector<2x96xf32> to vector<2x32xf32>
    %430 = arith.mulf %428, %367 : vector<2x32xf32>
    %431 = arith.mulf %427, %426 : vector<2x32xf32>
    %432 = arith.addf %430, %431 : vector<2x32xf32>
    %433 = math.tanh %432 : vector<2x32xf32>
    %434 = arith.mulf %429, %433 : vector<2x32xf32>
    %435 = tpu.concatenate %434, %389 in 1 : vector<2x32xf32>, vector<2x32xf32> -> vector<2x64xf32>
    %cst_94 = arith.constant dense<0.000000e+00> : vector<2x128xf32>
    %436 = tpu.matmul %435, %5, %cst_94 {dimension_numbers = #tpu.dot_dimension_numbers<[1], [0], [0], [1], [0, 0, 1, 1], [], []>} : vector<2x64xf32>, vector<64x128xf32>, vector<2x128xf32> -> vector<2x128xf32>
    %437 = vector.broadcast %9 : vector<1x128xf32> to vector<2x128xf32>
    %438 = arith.addf %436, %437 : vector<2x128xf32>
    %439 = vector.extract_strided_slice %438 {offsets = [0, 0], sizes = [2, 96], strides = [1, 1]} : vector<2x128xf32> to vector<2x96xf32>
    %440 = arith.negf %439 : vector<2x96xf32>
    %441 = math.exp %440 : vector<2x96xf32>
    %cst_95 = arith.constant 1.000000e+00 : f32
    %442 = vector.broadcast %cst_95 : f32 to vector<2x96xf32>
    %443 = arith.addf %442, %441 : vector<2x96xf32>
    %444 = arith.divf %442, %443 : vector<2x96xf32>
    %445 = vector.extract_strided_slice %438 {offsets = [0, 96], sizes = [2, 32], strides = [1, 1]} : vector<2x128xf32> to vector<2x32xf32>
    %446 = math.tanh %445 : vector<2x32xf32>
    %447 = vector.extract_strided_slice %444 {offsets = [0, 0], sizes = [2, 32], strides = [1, 1]} : vector<2x96xf32> to vector<2x32xf32>
    %448 = vector.extract_strided_slice %444 {offsets = [0, 32], sizes = [2, 32], strides = [1, 1]} : vector<2x96xf32> to vector<2x32xf32>
    %449 = vector.extract_strided_slice %444 {offsets = [0, 64], sizes = [2, 32], strides = [1, 1]} : vector<2x96xf32> to vector<2x32xf32>
    %450 = arith.mulf %448, %387 : vector<2x32xf32>
    %451 = arith.mulf %447, %446 : vector<2x32xf32>
    %452 = arith.addf %450, %451 : vector<2x32xf32>
    %453 = math.tanh %452 : vector<2x32xf32>
    %454 = arith.mulf %449, %453 : vector<2x32xf32>
    %455 = tpu.concatenate %454, %409 in 1 : vector<2x32xf32>, vector<2x32xf32> -> vector<2x64xf32>
    %cst_96 = arith.constant dense<0.000000e+00> : vector<2x128xf32>
    %456 = tpu.matmul %455, %7, %cst_96 {dimension_numbers = #tpu.dot_dimension_numbers<[1], [0], [0], [1], [0, 0, 1, 1], [], []>} : vector<2x64xf32>, vector<64x128xf32>, vector<2x128xf32> -> vector<2x128xf32>
    %457 = vector.broadcast %11 : vector<1x128xf32> to vector<2x128xf32>
    %458 = arith.addf %456, %457 : vector<2x128xf32>
    %459 = vector.extract_strided_slice %458 {offsets = [0, 0], sizes = [2, 96], strides = [1, 1]} : vector<2x128xf32> to vector<2x96xf32>
    %460 = arith.negf %459 : vector<2x96xf32>
    %461 = math.exp %460 : vector<2x96xf32>
    %cst_97 = arith.constant 1.000000e+00 : f32
    %462 = vector.broadcast %cst_97 : f32 to vector<2x96xf32>
    %463 = arith.addf %462, %461 : vector<2x96xf32>
    %464 = arith.divf %462, %463 : vector<2x96xf32>
    %465 = vector.extract_strided_slice %458 {offsets = [0, 96], sizes = [2, 32], strides = [1, 1]} : vector<2x128xf32> to vector<2x32xf32>
    %466 = math.tanh %465 : vector<2x32xf32>
    %467 = vector.extract_strided_slice %464 {offsets = [0, 0], sizes = [2, 32], strides = [1, 1]} : vector<2x96xf32> to vector<2x32xf32>
    %468 = vector.extract_strided_slice %464 {offsets = [0, 32], sizes = [2, 32], strides = [1, 1]} : vector<2x96xf32> to vector<2x32xf32>
    %469 = vector.extract_strided_slice %464 {offsets = [0, 64], sizes = [2, 32], strides = [1, 1]} : vector<2x96xf32> to vector<2x32xf32>
    %470 = arith.mulf %468, %407 : vector<2x32xf32>
    %471 = arith.mulf %467, %466 : vector<2x32xf32>
    %472 = arith.addf %470, %471 : vector<2x32xf32>
    %473 = math.tanh %472 : vector<2x32xf32>
    %474 = arith.mulf %469, %473 : vector<2x32xf32>
    %475 = arith.index_cast %c6_i32 : i32 to index
    %c0_98 = arith.constant 0 : index
    %c0_99 = arith.constant 0 : index
    %476 = vector.load %arg7[%475, %c0_98, %c0_99] : memref<8x2x32xf32, #tpu.memory_space<vmem>>, vector<1x2x32xf32>
    %477 = vector.shape_cast %476 : vector<1x2x32xf32> to vector<2x32xf32>
    %478 = vector.shape_cast %474 : vector<2x32xf32> to vector<1x2x32xf32>
    tpu.vector_store %arg7[%475, %c0_98, %c0_99], %478 {strides = array<i32>} : memref<8x2x32xf32, #tpu.memory_space<vmem>>, vector<1x2x32xf32>,
    %c7_i32 = arith.constant 7 : i32
    %479 = arith.index_cast %c7_i32 : i32 to index
    %c0_100 = arith.constant 0 : index
    %c0_101 = arith.constant 0 : index
    %480 = vector.load %arg1[%479, %c0_100, %c0_101] : memref<8x2x128xf32, #tpu.memory_space<vmem>>, vector<1x2x128xf32>
    %481 = vector.shape_cast %480 : vector<1x2x128xf32> to vector<2x128xf32>
    %cst_102 = arith.constant dense<0.000000e+00> : vector<2x128xf32>
    %482 = tpu.matmul %434, %3, %cst_102 {dimension_numbers = #tpu.dot_dimension_numbers<[1], [0], [0], [1], [0, 0, 1, 1], [], []>} : vector<2x32xf32>, vector<32x128xf32>, vector<2x128xf32> -> vector<2x128xf32>
    %483 = arith.addf %481, %482 : vector<2x128xf32>
    %484 = vector.extract_strided_slice %483 {offsets = [0, 0], sizes = [2, 96], strides = [1, 1]} : vector<2x128xf32> to vector<2x96xf32>
    %485 = arith.negf %484 : vector<2x96xf32>
    %486 = math.exp %485 : vector<2x96xf32>
    %cst_103 = arith.constant 1.000000e+00 : f32
    %487 = vector.broadcast %cst_103 : f32 to vector<2x96xf32>
    %488 = arith.addf %487, %486 : vector<2x96xf32>
    %489 = arith.divf %487, %488 : vector<2x96xf32>
    %490 = vector.extract_strided_slice %483 {offsets = [0, 96], sizes = [2, 32], strides = [1, 1]} : vector<2x128xf32> to vector<2x32xf32>
    %491 = math.tanh %490 : vector<2x32xf32>
    %492 = vector.extract_strided_slice %489 {offsets = [0, 0], sizes = [2, 32], strides = [1, 1]} : vector<2x96xf32> to vector<2x32xf32>
    %493 = vector.extract_strided_slice %489 {offsets = [0, 32], sizes = [2, 32], strides = [1, 1]} : vector<2x96xf32> to vector<2x32xf32>
    %494 = vector.extract_strided_slice %489 {offsets = [0, 64], sizes = [2, 32], strides = [1, 1]} : vector<2x96xf32> to vector<2x32xf32>
    %495 = arith.mulf %493, %432 : vector<2x32xf32>
    %496 = arith.mulf %492, %491 : vector<2x32xf32>
    %497 = arith.addf %495, %496 : vector<2x32xf32>
    %498 = math.tanh %497 : vector<2x32xf32>
    %499 = arith.mulf %494, %498 : vector<2x32xf32>
    %500 = tpu.concatenate %499, %454 in 1 : vector<2x32xf32>, vector<2x32xf32> -> vector<2x64xf32>
    %cst_104 = arith.constant dense<0.000000e+00> : vector<2x128xf32>
    %501 = tpu.matmul %500, %5, %cst_104 {dimension_numbers = #tpu.dot_dimension_numbers<[1], [0], [0], [1], [0, 0, 1, 1], [], []>} : vector<2x64xf32>, vector<64x128xf32>, vector<2x128xf32> -> vector<2x128xf32>
    %502 = vector.broadcast %9 : vector<1x128xf32> to vector<2x128xf32>
    %503 = arith.addf %501, %502 : vector<2x128xf32>
    %504 = vector.extract_strided_slice %503 {offsets = [0, 0], sizes = [2, 96], strides = [1, 1]} : vector<2x128xf32> to vector<2x96xf32>
    %505 = arith.negf %504 : vector<2x96xf32>
    %506 = math.exp %505 : vector<2x96xf32>
    %cst_105 = arith.constant 1.000000e+00 : f32
    %507 = vector.broadcast %cst_105 : f32 to vector<2x96xf32>
    %508 = arith.addf %507, %506 : vector<2x96xf32>
    %509 = arith.divf %507, %508 : vector<2x96xf32>
    %510 = vector.extract_strided_slice %503 {offsets = [0, 96], sizes = [2, 32], strides = [1, 1]} : vector<2x128xf32> to vector<2x32xf32>
    %511 = math.tanh %510 : vector<2x32xf32>
    %512 = vector.extract_strided_slice %509 {offsets = [0, 0], sizes = [2, 32], strides = [1, 1]} : vector<2x96xf32> to vector<2x32xf32>
    %513 = vector.extract_strided_slice %509 {offsets = [0, 32], sizes = [2, 32], strides = [1, 1]} : vector<2x96xf32> to vector<2x32xf32>
    %514 = vector.extract_strided_slice %509 {offsets = [0, 64], sizes = [2, 32], strides = [1, 1]} : vector<2x96xf32> to vector<2x32xf32>
    %515 = arith.mulf %513, %452 : vector<2x32xf32>
    %516 = arith.mulf %512, %511 : vector<2x32xf32>
    %517 = arith.addf %515, %516 : vector<2x32xf32>
    %518 = math.tanh %517 : vector<2x32xf32>
    %519 = arith.mulf %514, %518 : vector<2x32xf32>
    %520 = tpu.concatenate %519, %474 in 1 : vector<2x32xf32>, vector<2x32xf32> -> vector<2x64xf32>
    %cst_106 = arith.constant dense<0.000000e+00> : vector<2x128xf32>
    %521 = tpu.matmul %520, %7, %cst_106 {dimension_numbers = #tpu.dot_dimension_numbers<[1], [0], [0], [1], [0, 0, 1, 1], [], []>} : vector<2x64xf32>, vector<64x128xf32>, vector<2x128xf32> -> vector<2x128xf32>
    %522 = vector.broadcast %11 : vector<1x128xf32> to vector<2x128xf32>
    %523 = arith.addf %521, %522 : vector<2x128xf32>
    %524 = vector.extract_strided_slice %523 {offsets = [0, 0], sizes = [2, 96], strides = [1, 1]} : vector<2x128xf32> to vector<2x96xf32>
    %525 = arith.negf %524 : vector<2x96xf32>
    %526 = math.exp %525 : vector<2x96xf32>
    %cst_107 = arith.constant 1.000000e+00 : f32
    %527 = vector.broadcast %cst_107 : f32 to vector<2x96xf32>
    %528 = arith.addf %527, %526 : vector<2x96xf32>
    %529 = arith.divf %527, %528 : vector<2x96xf32>
    %530 = vector.extract_strided_slice %523 {offsets = [0, 96], sizes = [2, 32], strides = [1, 1]} : vector<2x128xf32> to vector<2x32xf32>
    %531 = math.tanh %530 : vector<2x32xf32>
    %532 = vector.extract_strided_slice %529 {offsets = [0, 0], sizes = [2, 32], strides = [1, 1]} : vector<2x96xf32> to vector<2x32xf32>
    %533 = vector.extract_strided_slice %529 {offsets = [0, 32], sizes = [2, 32], strides = [1, 1]} : vector<2x96xf32> to vector<2x32xf32>
    %534 = vector.extract_strided_slice %529 {offsets = [0, 64], sizes = [2, 32], strides = [1, 1]} : vector<2x96xf32> to vector<2x32xf32>
    %535 = arith.mulf %533, %472 : vector<2x32xf32>
    %536 = arith.mulf %532, %531 : vector<2x32xf32>
    %537 = arith.addf %535, %536 : vector<2x32xf32>
    %538 = math.tanh %537 : vector<2x32xf32>
    %539 = arith.mulf %534, %538 : vector<2x32xf32>
    %540 = arith.index_cast %c7_i32 : i32 to index
    %c0_108 = arith.constant 0 : index
    %c0_109 = arith.constant 0 : index
    %541 = vector.load %arg7[%540, %c0_108, %c0_109] : memref<8x2x32xf32, #tpu.memory_space<vmem>>, vector<1x2x32xf32>
    %542 = vector.shape_cast %541 : vector<1x2x32xf32> to vector<2x32xf32>
    %543 = vector.shape_cast %539 : vector<2x32xf32> to vector<1x2x32xf32>
    tpu.vector_store %arg7[%540, %c0_108, %c0_109], %543 {strides = array<i32>} : memref<8x2x32xf32, #tpu.memory_space<vmem>>, vector<1x2x32xf32>,
    %c8_i32 = arith.constant 8 : i32
    %c0_110 = arith.constant 0 : index
    %c0_111 = arith.constant 0 : index
    %c0_112 = arith.constant 0 : index
    %544 = vector.load %arg10[%c0_110, %c0_111, %c0_112] : memref<3x2x32xf32, #tpu.memory_space<vmem>>, vector<1x2x32xf32>
    %545 = vector.shape_cast %544 : vector<1x2x32xf32> to vector<2x32xf32>
    %546 = vector.shape_cast %499 : vector<2x32xf32> to vector<1x2x32xf32>
    tpu.vector_store %arg10[%c0_110, %c0_111, %c0_112], %546 {strides = array<i32>} : memref<3x2x32xf32, #tpu.memory_space<vmem>>, vector<1x2x32xf32>,
    %c0_113 = arith.constant 0 : index
    %c0_114 = arith.constant 0 : index
    %c0_115 = arith.constant 0 : index
    %547 = vector.load %arg11[%c0_113, %c0_114, %c0_115] : memref<3x2x32xf32, #tpu.memory_space<vmem>>, vector<1x2x32xf32>
    %548 = vector.shape_cast %547 : vector<1x2x32xf32> to vector<2x32xf32>
    %549 = vector.shape_cast %497 : vector<2x32xf32> to vector<1x2x32xf32>
    tpu.vector_store %arg11[%c0_113, %c0_114, %c0_115], %549 {strides = array<i32>} : memref<3x2x32xf32, #tpu.memory_space<vmem>>, vector<1x2x32xf32>,
    %c1_116 = arith.constant 1 : index
    %c0_117 = arith.constant 0 : index
    %c0_118 = arith.constant 0 : index
    %550 = vector.load %arg10[%c1_116, %c0_117, %c0_118] : memref<3x2x32xf32, #tpu.memory_space<vmem>>, vector<1x2x32xf32>
    %551 = vector.shape_cast %550 : vector<1x2x32xf32> to vector<2x32xf32>
    %552 = vector.shape_cast %519 : vector<2x32xf32> to vector<1x2x32xf32>
    tpu.vector_store %arg10[%c1_116, %c0_117, %c0_118], %552 {strides = array<i32>} : memref<3x2x32xf32, #tpu.memory_space<vmem>>, vector<1x2x32xf32>,
    %c1_119 = arith.constant 1 : index
    %c0_120 = arith.constant 0 : index
    %c0_121 = arith.constant 0 : index
    %553 = vector.load %arg11[%c1_119, %c0_120, %c0_121] : memref<3x2x32xf32, #tpu.memory_space<vmem>>, vector<1x2x32xf32>
    %554 = vector.shape_cast %553 : vector<1x2x32xf32> to vector<2x32xf32>
    %555 = vector.shape_cast %517 : vector<2x32xf32> to vector<1x2x32xf32>
    tpu.vector_store %arg11[%c1_119, %c0_120, %c0_121], %555 {strides = array<i32>} : memref<3x2x32xf32, #tpu.memory_space<vmem>>, vector<1x2x32xf32>,
    %c2_122 = arith.constant 2 : index
    %c0_123 = arith.constant 0 : index
    %c0_124 = arith.constant 0 : index
    %556 = vector.load %arg10[%c2_122, %c0_123, %c0_124] : memref<3x2x32xf32, #tpu.memory_space<vmem>>, vector<1x2x32xf32>
    %557 = vector.shape_cast %556 : vector<1x2x32xf32> to vector<2x32xf32>
    %558 = vector.shape_cast %539 : vector<2x32xf32> to vector<1x2x32xf32>
    tpu.vector_store %arg10[%c2_122, %c0_123, %c0_124], %558 {strides = array<i32>} : memref<3x2x32xf32, #tpu.memory_space<vmem>>, vector<1x2x32xf32>,
    %c2_125 = arith.constant 2 : index
    %c0_126 = arith.constant 0 : index
    %c0_127 = arith.constant 0 : index
    %559 = vector.load %arg11[%c2_125, %c0_126, %c0_127] : memref<3x2x32xf32, #tpu.memory_space<vmem>>, vector<1x2x32xf32>
    %560 = vector.shape_cast %559 : vector<1x2x32xf32> to vector<2x32xf32>
    %561 = vector.shape_cast %537 : vector<2x32xf32> to vector<1x2x32xf32>
    tpu.vector_store %arg11[%c2_125, %c0_126, %c0_127], %561 {strides = array<i32>} : memref<3x2x32xf32, #tpu.memory_space<vmem>>, vector<1x2x32xf32>,
    %c0_i32_128 = arith.constant 0 : i32
    %562 = arith.cmpi eq, %arg0, %c0_i32_128 : i32
    %563 = arith.extui %562 : i1 to i32
    %c0_i32_129 = arith.constant 0 : i32
    %564 = arith.cmpi ne, %563, %c0_i32_129 : i32
    scf.if %564 {
      %c0_130 = arith.constant 0 : index
      %c0_131 = arith.constant 0 : index
      %c0_132 = arith.constant 0 : index
      %565 = vector.load %arg10[%c0_130, %c0_131, %c0_132] : memref<3x2x32xf32, #tpu.memory_space<vmem>>, vector<3x2x32xf32>
      %c0_133 = arith.constant 0 : index
      %c0_134 = arith.constant 0 : index
      %c0_135 = arith.constant 0 : index
      %566 = vector.load %arg8[%c0_133, %c0_134, %c0_135] : memref<3x2x32xf32, #tpu.memory_space<vmem>>, vector<3x2x32xf32>
      tpu.vector_store %arg8[%c0_133, %c0_134, %c0_135], %565 {strides = array<i32>} : memref<3x2x32xf32, #tpu.memory_space<vmem>>, vector<3x2x32xf32>,
      %c0_136 = arith.constant 0 : index
      %c0_137 = arith.constant 0 : index
      %c0_138 = arith.constant 0 : index
      %567 = vector.load %arg11[%c0_136, %c0_137, %c0_138] : memref<3x2x32xf32, #tpu.memory_space<vmem>>, vector<3x2x32xf32>
      %c0_139 = arith.constant 0 : index
      %c0_140 = arith.constant 0 : index
      %c0_141 = arith.constant 0 : index
      %568 = vector.load %arg9[%c0_139, %c0_140, %c0_141] : memref<3x2x32xf32, #tpu.memory_space<vmem>>, vector<3x2x32xf32>
      tpu.vector_store %arg9[%c0_139, %c0_140, %c0_141], %567 {strides = array<i32>} : memref<3x2x32xf32, #tpu.memory_space<vmem>>, vector<3x2x32xf32>,
    } else {
    }
    return
  }
  func.func @transform_0(%arg0: i32) -> (i32, i32, i32) {
    %c0_i32 = arith.constant 0 : i32
    %c0_i32_0 = arith.constant 0 : i32
    %c0_i32_1 = arith.constant 0 : i32
    return %arg0, %c0_i32, %c0_i32_0 : i32, i32, i32
  }
  func.func @transform_1(%arg0: i32) -> (i32, i32) {
    %c0_i32 = arith.constant 0 : i32
    %c0_i32_0 = arith.constant 0 : i32
    %c0_i32_1 = arith.constant 0 : i32
    return %c0_i32, %c0_i32_0 : i32, i32
  }
  func.func @transform_2(%arg0: i32) -> (i32, i32, i32) {
    %c0_i32 = arith.constant 0 : i32
    %c0_i32_0 = arith.constant 0 : i32
    %c0_i32_1 = arith.constant 0 : i32
    %c0_i32_2 = arith.constant 0 : i32
    return %c0_i32, %c0_i32_0, %c0_i32_1 : i32, i32, i32
  }
  func.func @transform_3(%arg0: i32) -> (i32, i32, i32) {
    %c0_i32 = arith.constant 0 : i32
    %c0_i32_0 = arith.constant 0 : i32
    %c0_i32_1 = arith.constant 0 : i32
    %c0_i32_2 = arith.constant 0 : i32
    return %c0_i32, %c0_i32_0, %c0_i32_1 : i32, i32, i32
  }
  func.func @transform_4(%arg0: i32) -> (i32, i32, i32) {
    %c0_i32 = arith.constant 0 : i32
    %c0_i32_0 = arith.constant 0 : i32
    %c0_i32_1 = arith.constant 0 : i32
    %c0_i32_2 = arith.constant 0 : i32
    return %c0_i32, %c0_i32_0, %c0_i32_1 : i32, i32, i32
  }
  func.func @transform_5(%arg0: i32) -> (i32, i32, i32) {
    %c0_i32 = arith.constant 0 : i32
    %c0_i32_0 = arith.constant 0 : i32
    %c0_i32_1 = arith.constant 0 : i32
    %c0_i32_2 = arith.constant 0 : i32
    return %c0_i32, %c0_i32_0, %c0_i32_1 : i32, i32, i32
  }
  func.func @transform_6(%arg0: i32) -> (i32, i32, i32) {
    %c0_i32 = arith.constant 0 : i32
    %c0_i32_0 = arith.constant 0 : i32
    %c0_i32_1 = arith.constant 0 : i32
    return %arg0, %c0_i32, %c0_i32_0 : i32, i32, i32
  }
  func.func @transform_7(%arg0: i32) -> (i32, i32, i32) {
    %c0_i32 = arith.constant 0 : i32
    %c0_i32_0 = arith.constant 0 : i32
    %c0_i32_1 = arith.constant 0 : i32
    %c0_i32_2 = arith.constant 0 : i32
    return %c0_i32, %c0_i32_0, %c0_i32_1 : i32, i32, i32
  }
  func.func @transform_8(%arg0: i32) -> (i32, i32, i32) {
    %c0_i32 = arith.constant 0 : i32
    %c0_i32_0 = arith.constant 0 : i32
    %c0_i32_1 = arith.constant 0 : i32
    %c0_i32_2 = arith.constant 0 : i32
    return %c0_i32, %c0_i32_0, %c0_i32_1 : i32, i32, i32
  }
}

</mosaic_0001>

<bundles_post_ra>
// kernel: decoder_forward.1
= control target key start
LH: loop header
LB: loop body
LE: loop exit
PB: predicated region body
PF: predicated region fallthrough
CT: control target
= control target key end

     0   :  { %14 = vsyncpa [#allocation5], 0  ;;  %v3836_v3 = vmov 0.0|0.0   ;;  %vm3837_vm0 = vmmov 0   ;;  %v3838_v6 = vmov 0.0   ;;  %vm35_vm1 = vcmask 254976   ;;  %s4602_s0 = inlined_call_operand.vmem [shape: f32[8,2,128], index: 0, kind: input, shape index: {}]   ;;  %s4603_s1 = inlined_call_operand.vmem [shape: f32[32,128], index: 1, kind: input, shape index: {}]   ;;  %s4604_s2 = inlined_call_operand.vmem [shape: f32[2,64,128], index: 2, kind: input, shape index: {}]   ;;  %s4605_s3 = inlined_call_operand.vmem [shape: f32[2,1,128], index: 3, kind: input, shape index: {}]   ;;  %s4606_s4 = inlined_call_operand.vmem [shape: f32[3,2,32], index: 4, kind: input, shape index: {}]   ;;  %s4607_s5 = inlined_call_operand.vmem [shape: f32[3,2,32], index: 5, kind: input, shape index: {}]   ;;  %s4608_s6 = inlined_call_operand.vmem [shape: f32[8,2,32], index: 6, kind: output, shape index: {0}]   ;;  %s4609_s7 = inlined_call_operand.hbm [shape: f32[3,2,32], index: 7, kind: output, shape index: {1}]   ;;  %s4610_s8 = inlined_call_operand.hbm [shape: f32[3,2,32], index: 8, kind: output, shape index: {2}]  }
   0x1   :  { %v45_v0 = vld [vmem:[%s4603_s1] sm:$0xff]  ;;  %v46_v1 = vld [vmem:[%s4603_s1 + $0x8] sm:$0xff]  ;;  %v47_v2 = vld [vmem:[%s4603_s1 + $0x10] sm:$0xff]  ;;  %3345 = vmatprep.subr.bf16.mxu0 %v3836_v3  ;;  %2961 = vmatprep.mubr.msk.f32.mxu0 %vm3837_vm0, %v3838_v6 }
   0x2   :  { %v3900_v4 = vpack.c.bf16 %v46_v1, %v45_v0  ;;  %v48_v5 = vld [vmem:[%s4603_s1 + $0x18] sm:$0xff]  ;;  %v32_v7 = vld [vmem:[%s4606_s4] sm:$0x3]  ;;  %3351 = vmatprep.subr.bf16.mxu1 %v3836_v3  ;;  %2980 = vmatprep.mubr.msk.f32.mxu1 %vm3837_vm0, %v3838_v6 }
   0x3   :  { %36 = vst.msk [vmem:[#allocation2] sm:$0x3] %vm35_vm1, %v32_v7 }
   0x4   :  { %15 = vsyncpa [#allocation7], 0  ;;  %3347 = vmatpush3.bf16.msra.mxu0 %v3900_v4  ;;  %v3915_v8 = vpack.c.bf16 %v48_v5, %v47_v2  ;;  %vm80_vm2 = vcmask 261120   ;;  %v39_v10 = vld [vmem:[%s4607_s5] sm:$0x3]  ;;  %s3839_s18 = smov 32  }
   0x5   :  { %3348 = vmatprep.subr.bf16.mxu0 %v3836_v3  ;;  %42 = vst.msk [vmem:[#allocation3] sm:$0x3] %vm35_vm1, %v39_v10  ;;  %v79_v11 = vld [vmem:[%s4602_s0] sm:$0x3]  ;;  %v33_v23 = vld [vmem:[%s4606_s4 + $0x2] sm:$0x3] }
   0x6   :  { %37 = vst.msk [vmem:[#allocation2 + $0x2] sm:$0x3] %vm35_vm1, %v33_v23  ;;  %v49_v28 = vld [vmem:[%s4604_s2] sm:$0xff]  ;;  %v50_v29 = vld [vmem:[%s4604_s2 + $0x8] sm:$0xff]  ;;  %v51_v30 = vld [vmem:[%s4604_s2 + $0x10] sm:$0xff]  ;;  %s3840_s1 = smov 64  }
   0x7   :  { %v3949_v31 = vpack.c.bf16 %v50_v29, %v49_v28  ;;  %v52_v32 = vld [vmem:[%s4604_s2 + $0x18] sm:$0xff]  ;;  %v53_v34 = vld [vmem:[%s4604_s2 + $0x20] sm:$0xff]  ;;  %v54_v35 = vld [vmem:[%s4604_s2 + $0x28] sm:$0xff]  ;;  %vm198_vm3 = vcmask 523264   ;;  %s3842_s14 = smov [#allocation6]  }
   0x8   :  { %3350 = vmatpush3.bf16.msra.mxu0 %v3915_v8  ;;  %v3955_v33 = vpack.c.bf16 %v52_v32, %v51_v30  ;;  %v3965_v36 = vpack.c.bf16 %v54_v35, %v53_v34  ;;  %v55_v37 = vld [vmem:[%s4604_s2 + $0x30] sm:$0xff]  ;;  %v56_v38 = vld [vmem:[%s4604_s2 + $0x38] sm:$0xff]  ;;  %v40_v47 = vld [vmem:[%s4607_s5 + $0x2] sm:$0x3]  ;;  %s2679_s15 = sshll.u32 %s3842_s14, 4  ;;  %s2680_s15 = int_to_ptr.vmem [resolvable:$true] %s2679_s15 }
   0x9   :  { %3363 = vmatprep.subr.bf16.mxu0 %v3836_v3  ;;  %3353 = vmatpush3.bf16.msra.mxu1 %v3949_v31  ;;  %v3976_v40 = vpack.c.bf16 %v56_v38, %v55_v37  ;;  %43 = vst.msk [vmem:[#allocation3 + $0x2] sm:$0x3] %vm35_vm1, %v40_v47  ;;  %v4001_v48 = vld [vmem:[%s4605_s3] ss:$0 sm:$0xff]  ;;  %v2713_v52 = vld [vmem:[%s4602_s0 + $0x2] sm:$0x3]  ;;  %p3793_p1 = scmp.lt.s32.totalorder %s2680_s15, %s2680_s15 }
   0xa   :  { %v69_v9 = vld [vmem:[#allocation2] sm:$0x3]  ;;  %3354 = vmatprep.subr.bf16.mxu1 %v3836_v3  ;;  %v2699_v23 = vld [vmem:[%s4604_s2 + $0x58] sm:$0xff]  ;;  %v2702_v29 = vld [vmem:[%s4604_s2 + $0x70] sm:$0xff]  ;;  %s3788_s20 = scalar_lea.vmem %s2680_s15, 96 }
   0xb   :  { %2962 = vmatmul.mubr.msk.f32.vlgmr.msra.gmra.mrb[0].mxu0 %vm80_vm2, %v69_v9  ;;  %v2703_v30 = vld [vmem:[%s4604_s2 + $0x78] sm:$0xff]  ;;  %p3789_p0 = scmp.ne.s32.totalorder %s2680_s15, %s3788_s20  ;;  %p3794_p2 = scmp.lt.s32.totalorder %s3788_s20, %s3788_s20 }
   0xc   :  { %2999 = vmatprep.mubr.msk.f32.mxu0 %vm3837_vm0, %v3838_v6  ;;  %v70_v16 = vld [vmem:[#allocation3] sm:$0x3]  ;;  %v4064_v34 = vpack.c.bf16 %v2703_v30, %v2702_v29 }
   0xd   :  { %3356 = vmatpush3.bf16.msra.mxu1 %v3955_v33  ;;  %v72_v41 = vld [vmem:[#allocation2 + $0x2] sm:$0x3]  ;;  %p3795_p3 = por %p3794_p2, %p3793_p1 }
   0xe   :  { %3357 = vmatprep.subr.bf16.mxu1 %v3836_v3 }
   0xf   :  { %p3796_p4 = pnand %p3795_p3, %p3789_p0 }
  0x10   :  { %v74_v57 = vld [vmem:[#allocation3 + $0x2] sm:$0x3] }
  0x11   :  { %3359 = vmatpush3.bf16.msra.mxu1 %v3965_v36 }
  0x12   :  { %3360 = vmatprep.subr.bf16.mxu1 %v3836_v3 }
  0x15   :  { %3362 = vmatpush3.bf16.msra.mxu1 %v3976_v40 }
  0x16   :  { %3375 = vmatprep.subr.bf16.mxu1 %v3836_v3 }
  0xde   :  { %v150_v12 = vpop.f32.mrb[0].mxu0 }
  0xdf   :  { %v154_v13 = vadd.f32 %v150_v12, %v79_v11  ;;  %v2963_v14 = vpop.f32.mrb[1].mxu0  ;;  %v34_v11 = vld [vmem:[%s4606_s4 + $0x4] sm:$0x3] }
  0xe0   :  { %38 = vst.msk [vmem:[#allocation2 + $0x4] sm:$0x3] %vm35_vm1, %v34_v11 }
  0xe1   :  { %3594 = vtanh.f32 %v154_v13  ;;  %v2706_v17 = vmul.f32 -1.442695, %v154_v13 }
  0xe3   :  { %3596 = vpow2.f32 %v2706_v17 }
  0xe7   :  { %v76_v35 = vld [vmem:[#allocation2 + $0x4] sm:$0x3] }
  0xeb   :  { %v3595_v15 = vpop.eup %3594 }
  0xec   :  { %168 = vrot.lane.b32.xlu0 %v3595_v15, %s3839_s18 }
  0xed   :  { %v3597_v18 = vpop.eup %3596 }
  0xee   :  { %v158_v19 = vadd.f32 1.0, %v3597_v18 }
  0xf0   :  { %163 = vrot.lane.b32.xlu0 %v70_v16, %s3839_s18  ;;  %3598 = vrcp.f32 %v158_v19  ;;  %v2696_v19 = vld [vmem:[%s4604_s2 + $0x40] sm:$0xff] }
  0xfa   :  { %v3599_v20 = vpop.eup %3598 }
 0x15e   :  { %v169_v21 = vpop.permute.xlu0 %168 }
 0x15f   :  { %v171_v22 = vmul.f32 %v3599_v20, %v169_v21  ;;  %v2698_v21 = vld [vmem:[%s4604_s2 + $0x50] sm:$0xff] }
 0x161   :  { %173 = vrot.lane.b32.xlu1 %v171_v22, %s3839_s18 }
 0x162   :  { %v164_v24 = vpop.permute.xlu0 %163 }
 0x163   :  { %v166_v25 = vmul.f32 %v3599_v20, %v164_v24 }
 0x1d3   :  { %v174_v26 = vpop.permute.xlu1 %173 }
 0x1d4   :  { %v3937_v27 = vadd.f32 %v174_v26, %v166_v25  ;;  %v4039_v25 = vpack.c.bf16 %v2699_v23, %v2698_v21  ;;  %v2700_v26 = vld [vmem:[%s4604_s2 + $0x60] sm:$0xff] }
 0x1d6   :  { %3600 = vtanh.f32 %v3937_v27 }
 0x1e0   :  { %v3601_v39 = vpop.eup %3600 }
 0x1e1   :  { %179 = vrot.lane.b32.xlu1 %v3601_v39, %s3839_s18 }
 0x1e5   :  { %188 = vrot.lane.b32.xlu1 %v72_v41, %s3839_s18 }
 0x253   :  { %v180_v42 = vpop.permute.xlu1 %179 }
 0x254   :  { %v182_v43 = vmul.f32 %v3599_v20, %v180_v42  ;;  %v2697_v20 = vld [vmem:[%s4604_s2 + $0x48] sm:$0xff] }
 0x255   :  { %v4032_v22 = vpack.c.bf16 %v2697_v20, %v2696_v19 }
 0x256   :  { %184 = vrot.lane.b32.xlu0 %v182_v43, %s3840_s1 }
 0x257   :  { %v189_v44 = vpop.permute.xlu1 %188  ;;  %3365 = vmatpush3.bf16.msra.mxu0 %v4032_v22 }
 0x258   :  { %3366 = vmatprep.subr.bf16.mxu0 %v3836_v3 }
 0x25b   :  { %3368 = vmatpush3.bf16.msra.mxu0 %v4039_v25 }
 0x25c   :  { %3369 = vmatprep.subr.bf16.mxu0 %v3836_v3 }
 0x2c8   :  { %v185_v45 = vpop.permute.xlu0 %184 }
 0x2c9   :  { %v191_v46 = vsel %vm80_vm2, %v185_v45, %v189_v44 }
 0x2ca   :  { %2981 = vmatmul.mubr.msk.f32.vlgmr.msra.gmra.mrb[0].mxu1 %vm198_vm3, %v191_v46 }
 0x2cb   :  { %3377 = vmatpush3.bf16.msra.mxu1 %v3900_v4  ;;  %3010 = vmatprep.mubr.msk.f32.mxu1 %vm3837_vm0, %v3838_v6 }
 0x2cc   :  { %3378 = vmatprep.subr.bf16.mxu1 %v3836_v3 }
 0x2cf   :  { %3380 = vmatpush3.bf16.msra.mxu1 %v3915_v8 }
 0x2d0   :  { %3393 = vmatprep.subr.bf16.mxu1 %v3836_v3 }
 0x2d2   :  { %3011 = vmatmul.mubr.msk.f32.vlgmr.msra.gmra.mrb[2].mxu1 %vm80_vm2, %v185_v45 }
 0x2d3   :  { %3048 = vmatprep.mubr.msk.f32.mxu1 %vm3837_vm0, %v3838_v6  ;;  %3395 = vmatpush3.bf16.msra.mxu1 %v4032_v22 }
 0x2d4   :  { %3396 = vmatprep.subr.bf16.mxu1 %v3836_v3 }
 0x2d7   :  { %3398 = vmatpush3.bf16.msra.mxu1 %v4039_v25 }
 0x2d8   :  { %3399 = vmatprep.subr.bf16.mxu1 %v3836_v3 }
 0x39d   :  { %v268_v49 = vpop.f32.mrb[0].mxu1 }
 0x39e   :  { %v269_v50 = vadd.f32 %v4001_v48, %v268_v49  ;;  %v2982_v51 = vpop.f32.mrb[1].mxu1  ;;  %v41_v49 = vld [vmem:[%s4607_s5 + $0x4] sm:$0x3] }
 0x39f   :  { %44 = vst.msk [vmem:[#allocation3 + $0x4] sm:$0x3] %vm35_vm1, %v41_v49 }
 0x3a0   :  { %3602 = vtanh.f32 %v269_v50  ;;  %v2709_v59 = vmul.f32 -1.442695, %v269_v50  ;;  %v4115_v50 = vld [vmem:[%s4605_s3 + $0x1] ss:$0 sm:$0xff] }
 0x3a5   :  { %v492_v53 = vpop.f32.mrb[2].mxu1 }
 0x3a6   :  { %v496_v54 = vadd.f32 %v2713_v52, %v492_v53  ;;  %v3012_v55 = vpop.f32.mrb[3].mxu1 }
 0x3a8   :  { %3604 = vtanh.f32 %v496_v54  ;;  %v2715_v60 = vmul.f32 -1.442695, %v496_v54 }
 0x3a9   :  { %3606 = vpow2.f32 %v2709_v59 }
 0x3aa   :  { %v3603_v56 = vpop.eup %3602  ;;  %3608 = vpow2.f32 %v2715_v60 }
 0x3ab   :  { %285 = vrot.lane.b32.xlu0 %v3603_v56, %s3839_s18 }
 0x3af   :  { %280 = vrot.lane.b32.xlu0 %v74_v57, %s3839_s18 }
 0x3b2   :  { %v3605_v58 = vpop.eup %3604 }
 0x3b3   :  { %506 = vrot.lane.b32.xlu1 %v3605_v58, %s3839_s18  ;;  %v3607_v61 = vpop.eup %3606  ;;  %v2721_v58 = vld [vmem:[%s4602_s0 + $0x4] sm:$0x3] }
 0x3b4   :  { %v275_v62 = vadd.f32 1.0, %v3607_v61  ;;  %v3609_v63 = vpop.eup %3608 }
 0x3b5   :  { %v500_v0 = vadd.f32 1.0, %v3609_v63  ;;  %v78_v63 = vld [vmem:[#allocation3 + $0x4] sm:$0x3] }
 0x3b6   :  { %3610 = vrcp.f32 %v275_v62 }
 0x3b7   :  { %3612 = vrcp.f32 %v500_v0 }
 0x3c0   :  { %v3611_v1 = vpop.eup %3610 }
 0x3c1   :  { %v3613_v7 = vpop.eup %3612 }
 0x3c2   :  { %v504_v16 = vmul.f32 %v3613_v7, %v3937_v27  ;;  %v2701_v27 = vld [vmem:[%s4604_s2 + $0x68] sm:$0xff]  ;;  %s3841_s2 = smov 96  }
 0x3c3   :  { %v4051_v28 = vpack.c.bf16 %v2701_v27, %v2700_v26 }
 0x3c5   :  { %3371 = vmatpush3.bf16.msra.mxu0 %v4051_v28  ;;  %3401 = vmatpush3.bf16.msra.mxu1 %v4051_v28 }
 0x3c6   :  { %3372 = vmatprep.subr.bf16.mxu0 %v3836_v3  ;;  %3402 = vmatprep.subr.bf16.mxu1 %v3836_v3 }
 0x3c9   :  { %3374 = vmatpush3.bf16.msra.mxu0 %v4064_v34  ;;  %3404 = vmatpush3.bf16.msra.mxu1 %v4064_v34 }
 0x3ca   :  { %3381 = vmatprep.subr.bf16.mxu0 %v3836_v3  ;;  %3411 = vmatprep.subr.bf16.mxu1 %v3836_v3 }
 0x41d   :  { %v286_v2 = vpop.permute.xlu0 %285 }
 0x41e   :  { %v288_v5 = vmul.f32 %v3611_v1, %v286_v2 }
 0x420   :  { %290 = vrot.lane.b32.xlu1 %v288_v5, %s3839_s18 }
 0x421   :  { %v281_v12 = vpop.permute.xlu0 %280 }
 0x422   :  { %v283_v13 = vmul.f32 %v3611_v1, %v281_v12 }
 0x425   :  { %v507_v9 = vpop.permute.xlu1 %506 }
 0x426   :  { %v509_v10 = vmul.f32 %v3613_v7, %v507_v9 }
 0x428   :  { %511 = vrot.lane.b32.xlu0 %v509_v10, %s3839_s18 }
 0x492   :  { %v291_v14 = vpop.permute.xlu1 %290 }
 0x493   :  { %v4016_v15 = vadd.f32 %v291_v14, %v283_v13 }
 0x495   :  { %3614 = vtanh.f32 %v4016_v15 }
 0x49a   :  { %v512_v17 = vpop.permute.xlu0 %511 }
 0x49b   :  { %v4020_v18 = vadd.f32 %v512_v17, %v504_v16 }
 0x49d   :  { %3616 = vtanh.f32 %v4020_v18 }
 0x49f   :  { %v3615_v24 = vpop.eup %3614 }
 0x4a0   :  { %296 = vrot.lane.b32.xlu1 %v3615_v24, %s3839_s18 }
 0x4a7   :  { %v3617_v32 = vpop.eup %3616 }
 0x4a8   :  { %517 = vrot.lane.b32.xlu0 %v3617_v32, %s3839_s18 }
 0x4ac   :  { %305 = vrot.lane.b32.xlu0 %v76_v35, %s3839_s18 }
 0x512   :  { %v297_v37 = vpop.permute.xlu1 %296 }
 0x513   :  { %v299_v38 = vmul.f32 %v3611_v1, %v297_v37 }
 0x515   :  { %301 = vrot.lane.b32.xlu1 %v299_v38, %s3840_s1  ;;  %525 = vrot.lane.b32.xlu0 %v299_v38, %s3841_s2 }
 0x51a   :  { %v518_v39 = vpop.permute.xlu0 %517 }
 0x51b   :  { %v520_v41 = vmul.f32 %v3613_v7, %v518_v39 }
 0x51d   :  { %522 = vrot.lane.b32.xlu1 %v520_v41, %s3840_s1 }
 0x51e   :  { %v306_v42 = vpop.permute.xlu0 %305 }
 0x587   :  { %v302_v43 = vpop.permute.xlu1 %301  ;;  %v526_v46 = vpop.permute.xlu0 %525 }
 0x588   :  { %v308_v44 = vsel %vm80_vm2, %v302_v43, %v306_v42 }
 0x589   :  { %3000 = vmatmul.mubr.msk.f32.vlgmr.msra.gmra.mrb[2].mxu0 %vm198_vm3, %v308_v44 }
 0x58a   :  { %3383 = vmatpush3.bf16.msra.mxu0 %v3949_v31  ;;  %3029 = vmatprep.mubr.msk.f32.mxu0 %vm3837_vm0, %v3838_v6 }
 0x58b   :  { %3384 = vmatprep.subr.bf16.mxu0 %v3836_v3 }
 0x58e   :  { %3386 = vmatpush3.bf16.msra.mxu0 %v3955_v33 }
 0x58f   :  { %3387 = vmatprep.subr.bf16.mxu0 %v3836_v3  ;;  %v523_v45 = vpop.permute.xlu1 %522 }
 0x590   :  { %v528_v47 = vsel %vm80_vm2, %v523_v45, %v526_v46 }
 0x592   :  { %3389 = vmatpush3.bf16.msra.mxu0 %v3965_v36 }
 0x593   :  { %3390 = vmatprep.subr.bf16.mxu0 %v3836_v3 }
 0x596   :  { %3392 = vmatpush3.bf16.msra.mxu0 %v3976_v40 }
 0x597   :  { %3405 = vmatprep.subr.bf16.mxu0 %v3836_v3 }
 0x599   :  { %3030 = vmatmul.mubr.msk.f32.vlgmr.msra.gmra.mrb[4].mxu0 %vm198_vm3, %v528_v47 }
 0x59a   :  { %3407 = vmatpush3.bf16.msra.mxu0 %v3900_v4  ;;  %3059 = vmatprep.mubr.msk.f32.mxu0 %vm3837_vm0, %v3838_v6 }
 0x59b   :  { %3408 = vmatprep.subr.bf16.mxu0 %v3836_v3 }
 0x59e   :  { %3410 = vmatpush3.bf16.msra.mxu0 %v3915_v8 }
 0x59f   :  { %3423 = vmatprep.subr.bf16.mxu0 %v3836_v3 }
 0x5a1   :  { %3060 = vmatmul.mubr.msk.f32.vlgmr.msra.gmra.mrb[6].mxu0 %vm80_vm2, %v523_v45 }
 0x5a2   :  { %3425 = vmatpush3.bf16.msra.mxu0 %v4032_v22  ;;  %3097 = vmatprep.mubr.msk.f32.mxu0 %vm3837_vm0, %v3838_v6 }
 0x5a3   :  { %3426 = vmatprep.subr.bf16.mxu0 %v3836_v3 }
 0x5a6   :  { %3428 = vmatpush3.bf16.msra.mxu0 %v4039_v25 }
 0x5a7   :  { %3429 = vmatprep.subr.bf16.mxu0 %v3836_v3 }
 0x5aa   :  { %3431 = vmatpush3.bf16.msra.mxu0 %v4051_v28 }
 0x5ab   :  { %3432 = vmatprep.subr.bf16.mxu0 %v3836_v3 }
 0x5ae   :  { %3434 = vmatpush3.bf16.msra.mxu0 %v4064_v34 }
 0x5af   :  { %3441 = vmatprep.subr.bf16.mxu0 %v3836_v3 }
 0x65c   :  { %v384_v51 = vpop.f32.mrb[2].mxu0 }
 0x65d   :  { %v385_v52 = vadd.f32 %v4115_v50, %v384_v51  ;;  %v3001_v53 = vpop.f32.mrb[3].mxu0 }
 0x65f   :  { %3618 = vtanh.f32 %v385_v52  ;;  %v2712_v1 = vmul.f32 -1.442695, %v385_v52 }
 0x669   :  { %v3619_v54 = vpop.eup %3618 }
 0x66a   :  { %401 = vrot.lane.b32.xlu1 %v3619_v54, %s3839_s18 }
 0x66c   :  { %v598_v55 = vpop.f32.mrb[4].mxu0 }
 0x66d   :  { %v599_v56 = vadd.f32 %v4001_v48, %v598_v55  ;;  %v3031_v57 = vpop.f32.mrb[5].mxu0 }
 0x66f   :  { %3620 = vtanh.f32 %v599_v56  ;;  %v2717_v5 = vmul.f32 -1.442695, %v599_v56 }
 0x674   :  { %v807_v59 = vpop.f32.mrb[6].mxu0 }
 0x675   :  { %v811_v60 = vadd.f32 %v2721_v58, %v807_v59  ;;  %v3061_v61 = vpop.f32.mrb[7].mxu0 }
 0x677   :  { %3622 = vtanh.f32 %v811_v60  ;;  %v2723_v9 = vmul.f32 -1.442695, %v811_v60 }
 0x678   :  { %3624 = vpow2.f32 %v2712_v1  ;;  %v2729_v1 = vld [vmem:[%s4602_s0 + $0x6] sm:$0x3] }
 0x679   :  { %v3621_v62 = vpop.eup %3620  ;;  %3626 = vpow2.f32 %v2717_v5 }
 0x67a   :  { %611 = vrot.lane.b32.xlu0 %v3621_v62, %s3839_s18 }
 0x67e   :  { %396 = vrot.lane.b32.xlu0 %v78_v63, %s3839_s18 }
 0x681   :  { %v3623_v0 = vpop.eup %3622 }
 0x682   :  { %821 = vrot.lane.b32.xlu1 %v3623_v0, %s3839_s18  ;;  %v3625_v2 = vpop.eup %3624 }
 0x683   :  { %v391_v7 = vadd.f32 1.0, %v3625_v2  ;;  %v3627_v10 = vpop.eup %3626 }
 0x684   :  { %v605_v14 = vadd.f32 1.0, %v3627_v10 }
 0x685   :  { %3628 = vrcp.f32 %v391_v7 }
 0x686   :  { %3630 = vpow2.f32 %v2723_v9 }
 0x687   :  { %3632 = vrcp.f32 %v605_v14 }
 0x68f   :  { %v3629_v11 = vpop.eup %3628 }
 0x690   :  { %v3631_v16 = vpop.eup %3630 }
 0x691   :  { %v815_v17 = vadd.f32 1.0, %v3631_v16  ;;  %v3633_v19 = vpop.eup %3632 }
 0x692   :  { %v609_v37 = vmul.f32 %v3633_v19, %v4016_v15 }
 0x693   :  { %3634 = vrcp.f32 %v815_v17 }
 0x69d   :  { %v3635_v23 = vpop.eup %3634 }
 0x69e   :  { %v819_v41 = vmul.f32 %v3635_v23, %v4020_v18 }
 0x6dc   :  { %v402_v12 = vpop.permute.xlu1 %401 }
 0x6dd   :  { %v404_v13 = vmul.f32 %v3629_v11, %v402_v12 }
 0x6df   :  { %406 = vrot.lane.b32.xlu1 %v404_v13, %s3839_s18 }
 0x6ec   :  { %v612_v20 = vpop.permute.xlu0 %611 }
 0x6ed   :  { %v614_v21 = vmul.f32 %v3633_v19, %v612_v20 }
 0x6ef   :  { %616 = vrot.lane.b32.xlu0 %v614_v21, %s3839_s18 }
 0x6f0   :  { %v397_v27 = vpop.permute.xlu0 %396 }
 0x6f1   :  { %v399_v29 = vmul.f32 %v3629_v11, %v397_v27 }
 0x6f4   :  { %v822_v24 = vpop.permute.xlu1 %821 }
 0x6f5   :  { %v824_v26 = vmul.f32 %v3635_v23, %v822_v24 }
 0x6f7   :  { %826 = vrot.lane.b32.xlu1 %v824_v26, %s3839_s18 }
 0x751   :  { %v407_v30 = vpop.permute.xlu1 %406 }
 0x752   :  { %v4129_v32 = vadd.f32 %v407_v30, %v399_v29 }
 0x754   :  { %3636 = vtanh.f32 %v4129_v32 }
 0x75e   :  { %v3637_v35 = vpop.eup %3636 }
 0x75f   :  { %412 = vrot.lane.b32.xlu0 %v3637_v35, %s3839_s18 }
 0x761   :  { %v617_v38 = vpop.permute.xlu0 %616 }
 0x762   :  { %v4134_v39 = vadd.f32 %v617_v38, %v609_v37 }
 0x764   :  { %3638 = vtanh.f32 %v4134_v39 }
 0x769   :  { %v827_v42 = vpop.permute.xlu1 %826 }
 0x76a   :  { %v4138_v43 = vadd.f32 %v827_v42, %v819_v41 }
 0x76c   :  { %3640 = vtanh.f32 %v4138_v43 }
 0x76e   :  { %v3639_v44 = vpop.eup %3638 }
 0x76f   :  { %622 = vrot.lane.b32.xlu1 %v3639_v44, %s3839_s18 }
 0x776   :  { %v3641_v45 = vpop.eup %3640 }
 0x777   :  { %832 = vrot.lane.b32.xlu0 %v3641_v45, %s3839_s18 }
 0x7d1   :  { %v413_v46 = vpop.permute.xlu0 %412 }
 0x7d2   :  { %v4143_v15 = vmul.f32 %v3629_v11, %v413_v46 }
 0x7d4   :  { %630 = vrot.lane.b32.xlu0 %v4143_v15, %s3841_s2 }
 0x7e1   :  { %v623_v47 = vpop.permute.xlu1 %622 }
 0x7e2   :  { %v625_v49 = vmul.f32 %v3633_v19, %v623_v47 }
 0x7e4   :  { %627 = vrot.lane.b32.xlu1 %v625_v49, %s3840_s1  ;;  %840 = vrot.lane.b32.xlu0 %v625_v49, %s3841_s2 }
 0x7e9   :  { %v833_v18 = vpop.permute.xlu0 %832 }
 0x7ea   :  { %v835_v51 = vmul.f32 %v3635_v23, %v833_v18 }
 0x7ec   :  { %837 = vrot.lane.b32.xlu1 %v835_v51, %s3840_s1 }
 0x846   :  { %v631_v52 = vpop.permute.xlu0 %630 }
 0x856   :  { %v628_v53 = vpop.permute.xlu1 %627  ;;  %v841_v56 = vpop.permute.xlu0 %840 }
 0x857   :  { %v633_v54 = vsel %vm80_vm2, %v628_v53, %v631_v52 }
 0x858   :  { %3049 = vmatmul.mubr.msk.f32.vlgmr.msra.gmra.mrb[4].mxu1 %vm198_vm3, %v633_v54 }
 0x859   :  { %3413 = vmatpush3.bf16.msra.mxu1 %v3949_v31  ;;  %3078 = vmatprep.mubr.msk.f32.mxu1 %vm3837_vm0, %v3838_v6 }
 0x85a   :  { %3414 = vmatprep.subr.bf16.mxu1 %v3836_v3 }
 0x85d   :  { %3416 = vmatpush3.bf16.msra.mxu1 %v3955_v33 }
 0x85e   :  { %3417 = vmatprep.subr.bf16.mxu1 %v3836_v3  ;;  %v838_v55 = vpop.permute.xlu1 %837 }
 0x85f   :  { %v843_v57 = vsel %vm80_vm2, %v838_v55, %v841_v56 }
 0x861   :  { %3419 = vmatpush3.bf16.msra.mxu1 %v3965_v36 }
 0x862   :  { %3420 = vmatprep.subr.bf16.mxu1 %v3836_v3 }
 0x865   :  { %3422 = vmatpush3.bf16.msra.mxu1 %v3976_v40 }
 0x866   :  { %3435 = vmatprep.subr.bf16.mxu1 %v3836_v3 }
 0x868   :  { %3079 = vmatmul.mubr.msk.f32.vlgmr.msra.gmra.mrb[6].mxu1 %vm198_vm3, %v843_v57 }
 0x869   :  { %3437 = vmatpush3.bf16.msra.mxu1 %v3900_v4  ;;  %3108 = vmatprep.mubr.msk.f32.mxu1 %vm3837_vm0, %v3838_v6 }
 0x86a   :  { %3438 = vmatprep.subr.bf16.mxu1 %v3836_v3 }
 0x86d   :  { %3440 = vmatpush3.bf16.msra.mxu1 %v3915_v8 }
 0x86e   :  { %3453 = vmatprep.subr.bf16.mxu1 %v3836_v3 }
 0x870   :  { %3109 = vmatmul.mubr.msk.f32.vlgmr.msra.gmra.mrb[8].mxu1 %vm80_vm2, %v838_v55 }
 0x871   :  { %3455 = vmatpush3.bf16.msra.mxu1 %v4032_v22  ;;  %3146 = vmatprep.mubr.msk.f32.mxu1 %vm3837_vm0, %v3838_v6 }
 0x872   :  { %3456 = vmatprep.subr.bf16.mxu1 %v3836_v3 }
 0x875   :  { %3458 = vmatpush3.bf16.msra.mxu1 %v4039_v25 }
 0x876   :  { %3459 = vmatprep.subr.bf16.mxu1 %v3836_v3 }
 0x879   :  { %3461 = vmatpush3.bf16.msra.mxu1 %v4051_v28 }
 0x87a   :  { %3462 = vmatprep.subr.bf16.mxu1 %v3836_v3 }
 0x87d   :  { %3464 = vmatpush3.bf16.msra.mxu1 %v4064_v34 }
 0x87e   :  { %3471 = vmatprep.subr.bf16.mxu1 %v3836_v3 }
 0x92b   :  { %v703_v58 = vpop.f32.mrb[4].mxu1 }
 0x92c   :  { %v704_v59 = vadd.f32 %v4115_v50, %v703_v58  ;;  %v3050_v60 = vpop.f32.mrb[5].mxu1 }
 0x92e   :  { %3642 = vtanh.f32 %v704_v59  ;;  %v2719_v11 = vmul.f32 -1.442695, %v704_v59 }
 0x938   :  { %v3643_v61 = vpop.eup %3642 }
 0x939   :  { %716 = vrot.lane.b32.xlu1 %v3643_v61, %s3839_s18 }
 0x93b   :  { %v913_v62 = vpop.f32.mrb[6].mxu1 }
 0x93c   :  { %v914_v63 = vadd.f32 %v4001_v48, %v913_v62  ;;  %v3080_v0 = vpop.f32.mrb[7].mxu1 }
 0x93e   :  { %3644 = vtanh.f32 %v914_v63  ;;  %v2725_v13 = vmul.f32 -1.442695, %v914_v63 }
 0x943   :  { %v1122_v2 = vpop.f32.mrb[8].mxu1 }
 0x944   :  { %v1126_v5 = vadd.f32 %v2729_v1, %v1122_v2  ;;  %v3110_v7 = vpop.f32.mrb[9].mxu1 }
 0x946   :  { %3646 = vtanh.f32 %v1126_v5  ;;  %v2731_v16 = vmul.f32 -1.442695, %v1126_v5 }
 0x947   :  { %3648 = vpow2.f32 %v2719_v11  ;;  %v2737_v11 = vld [vmem:[%s4602_s0 + $0x8] sm:$0x3] }
 0x948   :  { %v3645_v9 = vpop.eup %3644  ;;  %3650 = vpow2.f32 %v2725_v13 }
 0x949   :  { %926 = vrot.lane.b32.xlu0 %v3645_v9, %s3839_s18 }
 0x950   :  { %v3647_v10 = vpop.eup %3646 }
 0x951   :  { %1136 = vrot.lane.b32.xlu1 %v3647_v10, %s3839_s18  ;;  %v3649_v12 = vpop.eup %3648 }
 0x952   :  { %v710_v14 = vadd.f32 1.0, %v3649_v12  ;;  %v3651_v17 = vpop.eup %3650 }
 0x953   :  { %v920_v23 = vadd.f32 1.0, %v3651_v17 }
 0x954   :  { %3652 = vrcp.f32 %v710_v14 }
 0x955   :  { %3654 = vpow2.f32 %v2731_v16 }
 0x956   :  { %3656 = vrcp.f32 %v920_v23 }
 0x95e   :  { %v3653_v19 = vpop.eup %3652 }
 0x95f   :  { %v3655_v24 = vpop.eup %3654  ;;  %v714_v41 = vmul.f32 %v3653_v19, %v4129_v32 }
 0x960   :  { %v1130_v26 = vadd.f32 1.0, %v3655_v24  ;;  %v3657_v27 = vpop.eup %3656 }
 0x961   :  { %v924_v46 = vmul.f32 %v3657_v27, %v4134_v39 }
 0x962   :  { %3658 = vrcp.f32 %v1130_v26 }
 0x96c   :  { %v3659_v35 = vpop.eup %3658 }
 0x96d   :  { %v1134_v18 = vmul.f32 %v3659_v35, %v4138_v43 }
 0x9ab   :  { %v717_v20 = vpop.permute.xlu1 %716 }
 0x9ac   :  { %v719_v21 = vmul.f32 %v3653_v19, %v717_v20 }
 0x9ae   :  { %721 = vrot.lane.b32.xlu0 %v719_v21, %s3839_s18 }
 0x9bb   :  { %v927_v29 = vpop.permute.xlu0 %926 }
 0x9bc   :  { %v929_v30 = vmul.f32 %v3657_v27, %v927_v29 }
 0x9be   :  { %931 = vrot.lane.b32.xlu1 %v929_v30, %s3839_s18 }
 0x9c3   :  { %v1137_v37 = vpop.permute.xlu1 %1136 }
 0x9c4   :  { %v1139_v38 = vmul.f32 %v3659_v35, %v1137_v37 }
 0x9c6   :  { %1141 = vrot.lane.b32.xlu0 %v1139_v38, %s3839_s18 }
 0xa20   :  { %v722_v42 = vpop.permute.xlu0 %721 }
 0xa21   :  { %v4193_v44 = vadd.f32 %v722_v42, %v714_v41 }
 0xa23   :  { %3660 = vtanh.f32 %v4193_v44 }
 0xa2d   :  { %v3661_v45 = vpop.eup %3660 }
 0xa2e   :  { %727 = vrot.lane.b32.xlu1 %v3661_v45, %s3839_s18 }
 0xa30   :  { %v932_v47 = vpop.permute.xlu1 %931 }
 0xa31   :  { %v4198_v49 = vadd.f32 %v932_v47, %v924_v46 }
 0xa33   :  { %3662 = vtanh.f32 %v4198_v49 }
 0xa38   :  { %v1142_v51 = vpop.permute.xlu0 %1141 }
 0xa39   :  { %v4202_v52 = vadd.f32 %v1142_v51, %v1134_v18 }
 0xa3b   :  { %3664 = vtanh.f32 %v4202_v52 }
 0xa3d   :  { %v3663_v32 = vpop.eup %3662 }
 0xa3e   :  { %937 = vrot.lane.b32.xlu0 %v3663_v32, %s3839_s18 }
 0xa45   :  { %v3665_v53 = vpop.eup %3664 }
 0xa46   :  { %1147 = vrot.lane.b32.xlu1 %v3665_v53, %s3839_s18 }
 0xaa0   :  { %v728_v54 = vpop.permute.xlu1 %727 }
 0xaa1   :  { %v4207_v39 = vmul.f32 %v3653_v19, %v728_v54 }
 0xaa3   :  { %945 = vrot.lane.b32.xlu1 %v4207_v39, %s3841_s2 }
 0xab0   :  { %v938_v55 = vpop.permute.xlu0 %937 }
 0xab1   :  { %v940_v56 = vmul.f32 %v3657_v27, %v938_v55 }
 0xab3   :  { %942 = vrot.lane.b32.xlu0 %v940_v56, %s3840_s1  ;;  %1155 = vrot.lane.b32.xlu1 %v940_v56, %s3841_s2 }
 0xab8   :  { %v1148_v43 = vpop.permute.xlu1 %1147 }
 0xab9   :  { %v1150_v57 = vmul.f32 %v3659_v35, %v1148_v43 }
 0xabb   :  { %1152 = vrot.lane.b32.xlu0 %v1150_v57, %s3840_s1 }
 0xb15   :  { %v946_v58 = vpop.permute.xlu1 %945 }
 0xb25   :  { %v943_v59 = vpop.permute.xlu0 %942  ;;  %v1156_v62 = vpop.permute.xlu1 %1155 }
 0xb26   :  { %v948_v60 = vsel %vm80_vm2, %v943_v59, %v946_v58 }
 0xb27   :  { %3098 = vmatmul.mubr.msk.f32.vlgmr.msra.gmra.mrb[8].mxu0 %vm198_vm3, %v948_v60 }
 0xb28   :  { %3443 = vmatpush3.bf16.msra.mxu0 %v3949_v31  ;;  %3127 = vmatprep.mubr.msk.f32.mxu0 %vm3837_vm0, %v3838_v6 }
 0xb29   :  { %3444 = vmatprep.subr.bf16.mxu0 %v3836_v3 }
 0xb2c   :  { %3446 = vmatpush3.bf16.msra.mxu0 %v3955_v33 }
 0xb2d   :  { %3447 = vmatprep.subr.bf16.mxu0 %v3836_v3  ;;  %v1153_v61 = vpop.permute.xlu0 %1152 }
 0xb2e   :  { %v1158_v63 = vsel %vm80_vm2, %v1153_v61, %v1156_v62 }
 0xb30   :  { %3449 = vmatpush3.bf16.msra.mxu0 %v3965_v36 }
 0xb31   :  { %3450 = vmatprep.subr.bf16.mxu0 %v3836_v3 }
 0xb34   :  { %3452 = vmatpush3.bf16.msra.mxu0 %v3976_v40 }
 0xb35   :  { %3465 = vmatprep.subr.bf16.mxu0 %v3836_v3 }
 0xb37   :  { %3128 = vmatmul.mubr.msk.f32.vlgmr.msra.gmra.mrb[10].mxu0 %vm198_vm3, %v1158_v63 }
 0xb38   :  { %3467 = vmatpush3.bf16.msra.mxu0 %v3900_v4  ;;  %3157 = vmatprep.mubr.msk.f32.mxu0 %vm3837_vm0, %v3838_v6 }
 0xb39   :  { %3468 = vmatprep.subr.bf16.mxu0 %v3836_v3 }
 0xb3c   :  { %3470 = vmatpush3.bf16.msra.mxu0 %v3915_v8 }
 0xb3d   :  { %3483 = vmatprep.subr.bf16.mxu0 %v3836_v3 }
 0xb3f   :  { %3158 = vmatmul.mubr.msk.f32.vlgmr.msra.gmra.mrb[12].mxu0 %vm80_vm2, %v1153_v61 }
 0xb40   :  { %3485 = vmatpush3.bf16.msra.mxu0 %v4032_v22  ;;  %3195 = vmatprep.mubr.msk.f32.mxu0 %vm3837_vm0, %v3838_v6 }
 0xb41   :  { %3486 = vmatprep.subr.bf16.mxu0 %v3836_v3 }
 0xb44   :  { %3488 = vmatpush3.bf16.msra.mxu0 %v4039_v25 }
 0xb45   :  { %3489 = vmatprep.subr.bf16.mxu0 %v3836_v3 }
 0xb48   :  { %3491 = vmatpush3.bf16.msra.mxu0 %v4051_v28 }
 0xb49   :  { %3492 = vmatprep.subr.bf16.mxu0 %v3836_v3 }
 0xb4c   :  { %3494 = vmatpush3.bf16.msra.mxu0 %v4064_v34 }
 0xb4d   :  { %3501 = vmatprep.subr.bf16.mxu0 %v3836_v3 }
 0xbfa   :  { %v1018_v0 = vpop.f32.mrb[8].mxu0 }
 0xbfb   :  { %v1019_v1 = vadd.f32 %v4115_v50, %v1018_v0  ;;  %v3099_v2 = vpop.f32.mrb[9].mxu0 }
 0xbfd   :  { %3666 = vtanh.f32 %v1019_v1  ;;  %v2727_v19 = vmul.f32 -1.442695, %v1019_v1 }
 0xc07   :  { %v3667_v5 = vpop.eup %3666 }
 0xc08   :  { %1031 = vrot.lane.b32.xlu0 %v3667_v5, %s3839_s18 }
 0xc0a   :  { %v1228_v7 = vpop.f32.mrb[10].mxu0 }
 0xc0b   :  { %v1229_v9 = vadd.f32 %v4001_v48, %v1228_v7  ;;  %v3129_v10 = vpop.f32.mrb[11].mxu0 }
 0xc0d   :  { %3668 = vtanh.f32 %v1229_v9  ;;  %v2733_v21 = vmul.f32 -1.442695, %v1229_v9 }
 0xc12   :  { %v1437_v12 = vpop.f32.mrb[12].mxu0 }
 0xc13   :  { %v1441_v13 = vadd.f32 %v2737_v11, %v1437_v12  ;;  %v3159_v14 = vpop.f32.mrb[13].mxu0 }
 0xc15   :  { %3670 = vtanh.f32 %v1441_v13  ;;  %v2739_v24 = vmul.f32 -1.442695, %v1441_v13 }
 0xc16   :  { %3672 = vpow2.f32 %v2727_v19 }
 0xc17   :  { %v3669_v16 = vpop.eup %3668  ;;  %3674 = vpow2.f32 %v2733_v21 }
 0xc18   :  { %1241 = vrot.lane.b32.xlu1 %v3669_v16, %s3839_s18 }
 0xc1f   :  { %v3671_v17 = vpop.eup %3670 }
 0xc20   :  { %1451 = vrot.lane.b32.xlu0 %v3671_v17, %s3839_s18  ;;  %v3673_v20 = vpop.eup %3672 }
 0xc21   :  { %v1025_v23 = vadd.f32 1.0, %v3673_v20  ;;  %v3675_v26 = vpop.eup %3674  ;;  %v2745_v20 = vld [vmem:[%s4602_s0 + $0xa] sm:$0x3] }
 0xc22   :  { %v1235_v35 = vadd.f32 1.0, %v3675_v26 }
 0xc23   :  { %3676 = vrcp.f32 %v1025_v23 }
 0xc24   :  { %3678 = vpow2.f32 %v2739_v24 }
 0xc25   :  { %3680 = vrcp.f32 %v1235_v35 }
 0xc2d   :  { %v3677_v27 = vpop.eup %3676 }
 0xc2e   :  { %v3679_v37 = vpop.eup %3678  ;;  %v1029_v51 = vmul.f32 %v3677_v27, %v4193_v44 }
 0xc2f   :  { %v1445_v38 = vadd.f32 1.0, %v3679_v37  ;;  %v3681_v41 = vpop.eup %3680 }
 0xc30   :  { %v1239_v55 = vmul.f32 %v3681_v41, %v4198_v49 }
 0xc31   :  { %3682 = vrcp.f32 %v1445_v38 }
 0xc3b   :  { %v3683_v46 = vpop.eup %3682 }
 0xc3c   :  { %v1449_v57 = vmul.f32 %v3683_v46, %v4202_v52 }
 0xc7a   :  { %v1032_v29 = vpop.permute.xlu0 %1031 }
 0xc7b   :  { %v1034_v30 = vmul.f32 %v3677_v27, %v1032_v29 }
 0xc7d   :  { %1036 = vrot.lane.b32.xlu1 %v1034_v30, %s3839_s18 }
 0xc8a   :  { %v1242_v42 = vpop.permute.xlu1 %1241 }
 0xc8b   :  { %v1244_v45 = vmul.f32 %v3681_v41, %v1242_v42 }
 0xc8d   :  { %1246 = vrot.lane.b32.xlu0 %v1244_v45, %s3839_s18 }
 0xc92   :  { %v1452_v47 = vpop.permute.xlu0 %1451 }
 0xc93   :  { %v1454_v18 = vmul.f32 %v3683_v46, %v1452_v47 }
 0xc95   :  { %1456 = vrot.lane.b32.xlu1 %v1454_v18, %s3839_s18 }
 0xcef   :  { %v1037_v32 = vpop.permute.xlu1 %1036 }
 0xcf0   :  { %v4257_v53 = vadd.f32 %v1037_v32, %v1029_v51 }
 0xcf2   :  { %3684 = vtanh.f32 %v4257_v53 }
 0xcfc   :  { %v3685_v54 = vpop.eup %3684 }
 0xcfd   :  { %1042 = vrot.lane.b32.xlu0 %v3685_v54, %s3839_s18 }
 0xcff   :  { %v1247_v56 = vpop.permute.xlu0 %1246 }
 0xd00   :  { %v4262_v43 = vadd.f32 %v1247_v56, %v1239_v55 }
 0xd02   :  { %3686 = vtanh.f32 %v4262_v43 }
 0xd07   :  { %v1457_v58 = vpop.permute.xlu1 %1456 }
 0xd08   :  { %v4266_v59 = vadd.f32 %v1457_v58, %v1449_v57 }
 0xd0a   :  { %3688 = vtanh.f32 %v4266_v59 }
 0xd0c   :  { %v3687_v44 = vpop.eup %3686 }
 0xd0d   :  { %1252 = vrot.lane.b32.xlu1 %v3687_v44, %s3839_s18 }
 0xd14   :  { %v3689_v60 = vpop.eup %3688 }
 0xd15   :  { %1462 = vrot.lane.b32.xlu0 %v3689_v60, %s3839_s18 }
 0xd6f   :  { %v1043_v61 = vpop.permute.xlu0 %1042 }
 0xd70   :  { %v4271_v49 = vmul.f32 %v3677_v27, %v1043_v61 }
 0xd72   :  { %1260 = vrot.lane.b32.xlu0 %v4271_v49, %s3841_s2 }
 0xd7f   :  { %v1253_v62 = vpop.permute.xlu1 %1252 }
 0xd80   :  { %v1255_v63 = vmul.f32 %v3681_v41, %v1253_v62 }
 0xd82   :  { %1257 = vrot.lane.b32.xlu1 %v1255_v63, %s3840_s1  ;;  %1470 = vrot.lane.b32.xlu0 %v1255_v63, %s3841_s2 }
 0xd87   :  { %v1463_v52 = vpop.permute.xlu0 %1462 }
 0xd88   :  { %v1465_v0 = vmul.f32 %v3683_v46, %v1463_v52 }
 0xd8a   :  { %1467 = vrot.lane.b32.xlu1 %v1465_v0, %s3840_s1 }
 0xde4   :  { %v1261_v1 = vpop.permute.xlu0 %1260 }
 0xdf4   :  { %v1258_v2 = vpop.permute.xlu1 %1257  ;;  %v1471_v9 = vpop.permute.xlu0 %1470 }
 0xdf5   :  { %v1263_v5 = vsel %vm80_vm2, %v1258_v2, %v1261_v1 }
 0xdf6   :  { %3147 = vmatmul.mubr.msk.f32.vlgmr.msra.gmra.mrb[10].mxu1 %vm198_vm3, %v1263_v5 }
 0xdf7   :  { %3473 = vmatpush3.bf16.msra.mxu1 %v3949_v31  ;;  %3176 = vmatprep.mubr.msk.f32.mxu1 %vm3837_vm0, %v3838_v6 }
 0xdf8   :  { %3474 = vmatprep.subr.bf16.mxu1 %v3836_v3 }
 0xdfb   :  { %3476 = vmatpush3.bf16.msra.mxu1 %v3955_v33 }
 0xdfc   :  { %3477 = vmatprep.subr.bf16.mxu1 %v3836_v3  ;;  %v1468_v7 = vpop.permute.xlu1 %1467 }
 0xdfd   :  { %v1473_v10 = vsel %vm80_vm2, %v1468_v7, %v1471_v9 }
 0xdff   :  { %3479 = vmatpush3.bf16.msra.mxu1 %v3965_v36 }
 0xe00   :  { %3480 = vmatprep.subr.bf16.mxu1 %v3836_v3 }
 0xe03   :  { %3482 = vmatpush3.bf16.msra.mxu1 %v3976_v40 }
 0xe04   :  { %3495 = vmatprep.subr.bf16.mxu1 %v3836_v3 }
 0xe06   :  { %3177 = vmatmul.mubr.msk.f32.vlgmr.msra.gmra.mrb[12].mxu1 %vm198_vm3, %v1473_v10 }
 0xe07   :  { %3497 = vmatpush3.bf16.msra.mxu1 %v3900_v4  ;;  %3206 = vmatprep.mubr.msk.f32.mxu1 %vm3837_vm0, %v3838_v6 }
 0xe08   :  { %3498 = vmatprep.subr.bf16.mxu1 %v3836_v3 }
 0xe0b   :  { %3500 = vmatpush3.bf16.msra.mxu1 %v3915_v8 }
 0xe0c   :  { %3513 = vmatprep.subr.bf16.mxu1 %v3836_v3 }
 0xe0e   :  { %3207 = vmatmul.mubr.msk.f32.vlgmr.msra.gmra.mrb[14].mxu1 %vm80_vm2, %v1468_v7 }
 0xe0f   :  { %3515 = vmatpush3.bf16.msra.mxu1 %v4032_v22  ;;  %3244 = vmatprep.mubr.msk.f32.mxu1 %vm3837_vm0, %v3838_v6 }
 0xe10   :  { %3516 = vmatprep.subr.bf16.mxu1 %v3836_v3 }
 0xe13   :  { %3518 = vmatpush3.bf16.msra.mxu1 %v4039_v25 }
 0xe14   :  { %3519 = vmatprep.subr.bf16.mxu1 %v3836_v3 }
 0xe17   :  { %3521 = vmatpush3.bf16.msra.mxu1 %v4051_v28 }
 0xe18   :  { %3522 = vmatprep.subr.bf16.mxu1 %v3836_v3 }
 0xe1b   :  { %3524 = vmatpush3.bf16.msra.mxu1 %v4064_v34 }
 0xe1c   :  { %3531 = vmatprep.subr.bf16.mxu1 %v3836_v3 }
 0xec9   :  { %v1333_v11 = vpop.f32.mrb[10].mxu1 }
 0xeca   :  { %v1334_v12 = vadd.f32 %v4115_v50, %v1333_v11  ;;  %v3148_v13 = vpop.f32.mrb[11].mxu1 }
 0xecc   :  { %3690 = vtanh.f32 %v1334_v12  ;;  %v2735_v29 = vmul.f32 -1.442695, %v1334_v12 }
 0xed6   :  { %v3691_v14 = vpop.eup %3690 }
 0xed7   :  { %1346 = vrot.lane.b32.xlu1 %v3691_v14, %s3839_s18 }
 0xed9   :  { %v1543_v16 = vpop.f32.mrb[12].mxu1 }
 0xeda   :  { %v1544_v17 = vadd.f32 %v4001_v48, %v1543_v16  ;;  %v3178_v19 = vpop.f32.mrb[13].mxu1 }
 0xedc   :  { %3692 = vtanh.f32 %v1544_v17  ;;  %v2741_v48 = vmul.f32 -1.442695, %v1544_v17 }
 0xee1   :  { %v1752_v21 = vpop.f32.mrb[14].mxu1 }
 0xee2   :  { %v1756_v23 = vadd.f32 %v2745_v20, %v1752_v21  ;;  %v3208_v24 = vpop.f32.mrb[15].mxu1 }
 0xee4   :  { %3694 = vtanh.f32 %v1756_v23  ;;  %v2747_v37 = vmul.f32 -1.442695, %v1756_v23 }
 0xee5   :  { %3696 = vpow2.f32 %v2735_v29 }
 0xee6   :  { %v3693_v26 = vpop.eup %3692  ;;  %3698 = vpow2.f32 %v2741_v48  ;;  %v2753_v48 = vld [vmem:[%s4602_s0 + $0xc] sm:$0x3] }
 0xee7   :  { %1556 = vrot.lane.b32.xlu0 %v3693_v26, %s3839_s18 }
 0xeee   :  { %v3695_v27 = vpop.eup %3694 }
 0xeef   :  { %1766 = vrot.lane.b32.xlu1 %v3695_v27, %s3839_s18  ;;  %v3697_v30 = vpop.eup %3696  ;;  %v4378_v27 = vld [vmem:[%s4605_s3] ss:$0 sm:$0xff] }
 0xef0   :  { %v1340_v35 = vadd.f32 1.0, %v3697_v30  ;;  %v3699_v38 = vpop.eup %3698 }
 0xef1   :  { %v1550_v46 = vadd.f32 1.0, %v3699_v38 }
 0xef2   :  { %3700 = vrcp.f32 %v1340_v35 }
 0xef3   :  { %3702 = vpow2.f32 %v2747_v37 }
 0xef4   :  { %3704 = vrcp.f32 %v1550_v46 }
 0xefc   :  { %v3701_v41 = vpop.eup %3700 }
 0xefd   :  { %v3703_v47 = vpop.eup %3702  ;;  %v1344_v58 = vmul.f32 %v3701_v41, %v4257_v53 }
 0xefe   :  { %v1760_v18 = vadd.f32 1.0, %v3703_v47  ;;  %v3705_v51 = vpop.eup %3704 }
 0xeff   :  { %v1554_v62 = vmul.f32 %v3705_v51, %v4262_v43 }
 0xf00   :  { %3706 = vrcp.f32 %v1760_v18 }
 0xf0a   :  { %v3707_v55 = vpop.eup %3706 }
 0xf0b   :  { %v1764_v0 = vmul.f32 %v3707_v55, %v4266_v59 }
 0xf49   :  { %v1347_v42 = vpop.permute.xlu1 %1346 }
 0xf4a   :  { %v1349_v45 = vmul.f32 %v3701_v41, %v1347_v42 }
 0xf4c   :  { %1351 = vrot.lane.b32.xlu0 %v1349_v45, %s3839_s18 }
 0xf59   :  { %v1557_v32 = vpop.permute.xlu0 %1556 }
 0xf5a   :  { %v1559_v54 = vmul.f32 %v3705_v51, %v1557_v32 }
 0xf5c   :  { %1561 = vrot.lane.b32.xlu1 %v1559_v54, %s3839_s18 }
 0xf61   :  { %v1767_v56 = vpop.permute.xlu1 %1766 }
 0xf62   :  { %v1769_v57 = vmul.f32 %v3707_v55, %v1767_v56 }
 0xf64   :  { %1771 = vrot.lane.b32.xlu0 %v1769_v57, %s3839_s18 }
 0xfbe   :  { %v1352_v44 = vpop.permute.xlu0 %1351 }
 0xfbf   :  { %v4321_v60 = vadd.f32 %v1352_v44, %v1344_v58 }
 0xfc1   :  { %3708 = vtanh.f32 %v4321_v60 }
 0xfcb   :  { %v3709_v61 = vpop.eup %3708 }
 0xfcc   :  { %1357 = vrot.lane.b32.xlu1 %v3709_v61, %s3839_s18 }
 0xfce   :  { %v1562_v63 = vpop.permute.xlu1 %1561 }
 0xfcf   :  { %v4326_v52 = vadd.f32 %v1562_v63, %v1554_v62 }
 0xfd1   :  { %3710 = vtanh.f32 %v4326_v52 }
 0xfd6   :  { %v1772_v1 = vpop.permute.xlu0 %1771 }
 0xfd7   :  { %v4330_v2 = vadd.f32 %v1772_v1, %v1764_v0 }
 0xfd9   :  { %3712 = vtanh.f32 %v4330_v2 }
 0xfdb   :  { %v3711_v53 = vpop.eup %3710 }
 0xfdc   :  { %1567 = vrot.lane.b32.xlu0 %v3711_v53, %s3839_s18 }
 0xfe3   :  { %v3713_v5 = vpop.eup %3712 }
 0xfe4   :  { %1777 = vrot.lane.b32.xlu1 %v3713_v5, %s3839_s18 }
0x103e   :  { %v1358_v7 = vpop.permute.xlu1 %1357 }
0x103f   :  { %v4335_v43 = vmul.f32 %v3701_v41, %v1358_v7 }
0x1041   :  { %1575 = vrot.lane.b32.xlu1 %v4335_v43, %s3841_s2 }
0x104e   :  { %v1568_v9 = vpop.permute.xlu0 %1567 }
0x104f   :  { %v1570_v10 = vmul.f32 %v3705_v51, %v1568_v9 }
0x1051   :  { %1572 = vrot.lane.b32.xlu0 %v1570_v10, %s3840_s1  ;;  %1785 = vrot.lane.b32.xlu1 %v1570_v10, %s3841_s2 }
0x1056   :  { %v1778_v59 = vpop.permute.xlu1 %1777 }
0x1057   :  { %v1780_v11 = vmul.f32 %v3707_v55, %v1778_v59 }
0x1059   :  { %1782 = vrot.lane.b32.xlu0 %v1780_v11, %s3840_s1 }
0x10b3   :  { %v1576_v12 = vpop.permute.xlu1 %1575 }
0x10c3   :  { %v1573_v13 = vpop.permute.xlu0 %1572  ;;  %v1786_v17 = vpop.permute.xlu1 %1785 }
0x10c4   :  { %v1578_v14 = vsel %vm80_vm2, %v1573_v13, %v1576_v12 }
0x10c5   :  { %3196 = vmatmul.mubr.msk.f32.vlgmr.msra.gmra.mrb[14].mxu0 %vm198_vm3, %v1578_v14 }
0x10c6   :  { %3503 = vmatpush3.bf16.msra.mxu0 %v3949_v31  ;;  %3225 = vmatprep.mubr.msk.f32.mxu0 %vm3837_vm0, %v3838_v6 }
0x10c7   :  { %3504 = vmatprep.subr.bf16.mxu0 %v3836_v3 }
0x10ca   :  { %3506 = vmatpush3.bf16.msra.mxu0 %v3955_v33 }
0x10cb   :  { %3507 = vmatprep.subr.bf16.mxu0 %v3836_v3  ;;  %v1783_v16 = vpop.permute.xlu0 %1782 }
0x10cc   :  { %v1788_v19 = vsel %vm80_vm2, %v1783_v16, %v1786_v17 }
0x10ce   :  { %3509 = vmatpush3.bf16.msra.mxu0 %v3965_v36 }
0x10cf   :  { %3510 = vmatprep.subr.bf16.mxu0 %v3836_v3 }
0x10d2   :  { %3512 = vmatpush3.bf16.msra.mxu0 %v3976_v40 }
0x10d3   :  { %3525 = vmatprep.subr.bf16.mxu0 %v3836_v3 }
0x10d5   :  { %3226 = vmatmul.mubr.msk.f32.vlgmr.msra.gmra.mrb[16].mxu0 %vm198_vm3, %v1788_v19 }
0x10d6   :  { %3527 = vmatpush3.bf16.msra.mxu0 %v3900_v4  ;;  %3255 = vmatprep.mubr.msk.f32.mxu0 %vm3837_vm0, %v3838_v6 }
0x10d7   :  { %3528 = vmatprep.subr.bf16.mxu0 %v3836_v3 }
0x10da   :  { %3530 = vmatpush3.bf16.msra.mxu0 %v3915_v8 }
0x10db   :  { %3543 = vmatprep.subr.bf16.mxu0 %v3836_v3 }
0x10dd   :  { %3256 = vmatmul.mubr.msk.f32.vlgmr.msra.gmra.mrb[18].mxu0 %vm80_vm2, %v1783_v16 }
0x10de   :  { %3545 = vmatpush3.bf16.msra.mxu0 %v4032_v22  ;;  %3293 = vmatprep.mubr.msk.f32.mxu0 %vm3837_vm0, %v3838_v6 }
0x10df   :  { %3546 = vmatprep.subr.bf16.mxu0 %v3836_v3 }
0x10e2   :  { %3548 = vmatpush3.bf16.msra.mxu0 %v4039_v25 }
0x10e3   :  { %3549 = vmatprep.subr.bf16.mxu0 %v3836_v3 }
0x10e6   :  { %3551 = vmatpush3.bf16.msra.mxu0 %v4051_v28 }
0x10e7   :  { %3552 = vmatprep.subr.bf16.mxu0 %v3836_v3 }
0x10ea   :  { %3554 = vmatpush3.bf16.msra.mxu0 %v4064_v34 }
0x10eb   :  { %3561 = vmatprep.subr.bf16.mxu0 %v3836_v3 }
0x1198   :  { %v1648_v20 = vpop.f32.mrb[14].mxu0 }
0x1199   :  { %v1649_v21 = vadd.f32 %v4115_v50, %v1648_v20  ;;  %v3197_v23 = vpop.f32.mrb[15].mxu0 }
0x119b   :  { %3714 = vtanh.f32 %v1649_v21  ;;  %v2743_v42 = vmul.f32 -1.442695, %v1649_v21 }
0x11a5   :  { %v3715_v24 = vpop.eup %3714 }
0x11a6   :  { %1661 = vrot.lane.b32.xlu0 %v3715_v24, %s3839_s18 }
0x11a8   :  { %v1858_v26 = vpop.f32.mrb[16].mxu0 }
0x11a9   :  { %v1859_v29 = vadd.f32 %v4378_v27, %v1858_v26  ;;  %v3227_v30 = vpop.f32.mrb[17].mxu0 }
0x11ab   :  { %3716 = vtanh.f32 %v1859_v29  ;;  %v2749_v46 = vmul.f32 -1.442695, %v1859_v29 }
0x11b0   :  { %v2067_v50 = vpop.f32.mrb[18].mxu0 }
0x11b1   :  { %v2071_v35 = vadd.f32 %v2753_v48, %v2067_v50  ;;  %v3257_v37 = vpop.f32.mrb[19].mxu0 }
0x11b3   :  { %3718 = vtanh.f32 %v2071_v35  ;;  %v2755_v18 = vmul.f32 -1.442695, %v2071_v35 }
0x11b4   :  { %3720 = vpow2.f32 %v2743_v42 }
0x11b5   :  { %v3717_v38 = vpop.eup %3716  ;;  %3722 = vpow2.f32 %v2749_v46 }
0x11b6   :  { %1871 = vrot.lane.b32.xlu1 %v3717_v38, %s3839_s18 }
0x11bd   :  { %v3719_v41 = vpop.eup %3718 }
0x11be   :  { %2081 = vrot.lane.b32.xlu0 %v3719_v41, %s3839_s18  ;;  %v3721_v45 = vpop.eup %3720 }
0x11bf   :  { %v1655_v47 = vadd.f32 1.0, %v3721_v45  ;;  %v3723_v51 = vpop.eup %3722 }
0x11c0   :  { %v1865_v56 = vadd.f32 1.0, %v3723_v51 }
0x11c1   :  { %3724 = vrcp.f32 %v1655_v47 }
0x11c2   :  { %3726 = vpow2.f32 %v2755_v18 }
0x11c3   :  { %3728 = vrcp.f32 %v1865_v56 }
0x11cb   :  { %v3725_v32 = vpop.eup %3724 }
0x11cc   :  { %v3727_v57 = vpop.eup %3726  ;;  %v1659_v53 = vmul.f32 %v3725_v32, %v4321_v60 }
0x11cd   :  { %v2075_v58 = vadd.f32 1.0, %v3727_v57  ;;  %v3729_v44 = vpop.eup %3728 }
0x11ce   :  { %v1869_v10 = vmul.f32 %v3729_v44, %v4326_v52 }
0x11cf   :  { %3730 = vrcp.f32 %v2075_v58 }
0x11d9   :  { %v3731_v63 = vpop.eup %3730 }
0x11da   :  { %v2079_v12 = vmul.f32 %v3731_v63, %v4330_v2 }
0x1218   :  { %v1662_v54 = vpop.permute.xlu0 %1661 }
0x1219   :  { %v1664_v55 = vmul.f32 %v3725_v32, %v1662_v54 }
0x121b   :  { %1666 = vrot.lane.b32.xlu1 %v1664_v55, %s3839_s18 }
0x1228   :  { %v1872_v61 = vpop.permute.xlu1 %1871 }
0x1229   :  { %v1874_v62 = vmul.f32 %v3729_v44, %v1872_v61 }
0x122b   :  { %1876 = vrot.lane.b32.xlu0 %v1874_v62, %s3839_s18 }
0x1230   :  { %v2082_v0 = vpop.permute.xlu0 %2081 }
0x1231   :  { %v2084_v1 = vmul.f32 %v3731_v63, %v2082_v0 }
0x1233   :  { %2086 = vrot.lane.b32.xlu1 %v2084_v1, %s3839_s18 }
0x128d   :  { %v1667_v5 = vpop.permute.xlu1 %1666 }
0x128e   :  { %v4390_v7 = vadd.f32 %v1667_v5, %v1659_v53 }
0x1290   :  { %3732 = vtanh.f32 %v4390_v7 }
0x129a   :  { %v3733_v9 = vpop.eup %3732 }
0x129b   :  { %1672 = vrot.lane.b32.xlu0 %v3733_v9, %s3839_s18 }
0x129d   :  { %v1877_v59 = vpop.permute.xlu0 %1876 }
0x129e   :  { %v4395_v11 = vadd.f32 %v1877_v59, %v1869_v10 }
0x12a0   :  { %3734 = vtanh.f32 %v4395_v11 }
0x12a5   :  { %v2087_v13 = vpop.permute.xlu1 %2086 }
0x12a6   :  { %v4399_v14 = vadd.f32 %v2087_v13, %v2079_v12 }
0x12a8   :  { %3736 = vtanh.f32 %v4399_v14 }
0x12aa   :  { %v3735_v60 = vpop.eup %3734 }
0x12ab   :  { %1882 = vrot.lane.b32.xlu1 %v3735_v60, %s3839_s18 }
0x12b2   :  { %v3737_v16 = vpop.eup %3736 }
0x12b3   :  { %2092 = vrot.lane.b32.xlu0 %v3737_v16, %s3839_s18 }
0x130d   :  { %v1673_v17 = vpop.permute.xlu0 %1672 }
0x130e   :  { %v4404_v52 = vmul.f32 %v3725_v32, %v1673_v17 }
0x1310   :  { %1890 = vrot.lane.b32.xlu0 %v4404_v52, %s3841_s2 }
0x131d   :  { %v1883_v19 = vpop.permute.xlu1 %1882 }
0x131e   :  { %v1885_v20 = vmul.f32 %v3729_v44, %v1883_v19 }
0x1320   :  { %1887 = vrot.lane.b32.xlu1 %v1885_v20, %s3840_s1  ;;  %2100 = vrot.lane.b32.xlu0 %v1885_v20, %s3841_s2 }
0x1325   :  { %v2093_v2 = vpop.permute.xlu0 %2092 }
0x1326   :  { %v2095_v21 = vmul.f32 %v3731_v63, %v2093_v2 }
0x1328   :  { %2097 = vrot.lane.b32.xlu1 %v2095_v21, %s3840_s1 }
0x1382   :  { %v1891_v23 = vpop.permute.xlu0 %1890 }
0x1392   :  { %v1888_v24 = vpop.permute.xlu1 %1887  ;;  %v2101_v30 = vpop.permute.xlu0 %2100 }
0x1393   :  { %v1893_v26 = vsel %vm80_vm2, %v1888_v24, %v1891_v23 }
0x1394   :  { %3245 = vmatmul.mubr.msk.f32.vlgmr.msra.gmra.mrb[16].mxu1 %vm198_vm3, %v1893_v26 }
0x1395   :  { %3533 = vmatpush3.bf16.msra.mxu1 %v3949_v31  ;;  %3274 = vmatprep.mubr.msk.f32.mxu1 %vm3837_vm0, %v3838_v6 }
0x1396   :  { %3534 = vmatprep.subr.bf16.mxu1 %v3836_v3 }
0x1399   :  { %3536 = vmatpush3.bf16.msra.mxu1 %v3955_v33 }
0x139a   :  { %3537 = vmatprep.subr.bf16.mxu1 %v3836_v3  ;;  %v2098_v29 = vpop.permute.xlu1 %2097 }
0x139b   :  { %v2103_v48 = vsel %vm80_vm2, %v2098_v29, %v2101_v30 }
0x139d   :  { %3539 = vmatpush3.bf16.msra.mxu1 %v3965_v36 }
0x139e   :  { %3540 = vmatprep.subr.bf16.mxu1 %v3836_v3 }
0x13a1   :  { %3542 = vmatpush3.bf16.msra.mxu1 %v3976_v40 }
0x13a2   :  { %3555 = vmatprep.subr.bf16.mxu1 %v3836_v3 }
0x13a4   :  { %3275 = vmatmul.mubr.msk.f32.vlgmr.msra.gmra.mrb[18].mxu1 %vm198_vm3, %v2103_v48 }
0x13a5   :  { %3557 = vmatpush3.bf16.msra.mxu1 %v3900_v4  ;;  %3304 = vmatprep.mubr.msk.f32.mxu1 %vm3837_vm0, %v3838_v6 }
0x13a6   :  { %3558 = vmatprep.subr.bf16.mxu1 %v3836_v3 }
0x13a9   :  { %3560 = vmatpush3.bf16.msra.mxu1 %v3915_v8  ;;  %v4444_v8 = vld [vmem:[%s4605_s3 + $0x1] ss:$0 sm:$0xff] }
0x13aa   :  { %3573 = vmatprep.subr.bf16.mxu1 %v3836_v3 }
0x13ac   :  { %3305 = vmatmul.mubr.msk.f32.vlgmr.msra.gmra.mrb[20].mxu1 %vm80_vm2, %v2098_v29 }
0x13ad   :  { %3575 = vmatpush3.bf16.msra.mxu1 %v4032_v22  ;;  %3342 = vmatprep.mubr.msk.f32.mxu1 %vm3837_vm0, %v3838_v6 }
0x13ae   :  { %3576 = vmatprep.subr.bf16.mxu1 %v3836_v3 }
0x13b1   :  { %3578 = vmatpush3.bf16.msra.mxu1 %v4039_v25 }
0x13b2   :  { %3579 = vmatprep.subr.bf16.mxu1 %v3836_v3 }
0x13b5   :  { %3581 = vmatpush3.bf16.msra.mxu1 %v4051_v28 }
0x13b6   :  { %3582 = vmatprep.subr.bf16.mxu1 %v3836_v3 }
0x13b9   :  { %3584 = vmatpush3.bf16.msra.mxu1 %v4064_v34  ;;  %v2761_v34 = vld [vmem:[%s4602_s0 + $0xe] sm:$0x3] }
0x1467   :  { %v1963_v4 = vpop.f32.mrb[16].mxu1 }
0x1468   :  { %v1964_v22 = vadd.f32 %v4444_v8, %v1963_v4  ;;  %v3246_v50 = vpop.f32.mrb[17].mxu1 }
0x146a   :  { %3738 = vtanh.f32 %v1964_v22  ;;  %v2751_v47 = vmul.f32 -1.442695, %v1964_v22 }
0x1474   :  { %v3739_v35 = vpop.eup %3738 }
0x1475   :  { %1976 = vrot.lane.b32.xlu1 %v3739_v35, %s3839_s18 }
0x1477   :  { %v2173_v25 = vpop.f32.mrb[18].mxu1 }
0x1478   :  { %v2174_v28 = vadd.f32 %v4378_v27, %v2173_v25  ;;  %v3276_v37 = vpop.f32.mrb[19].mxu1 }
0x147a   :  { %3740 = vtanh.f32 %v2174_v28  ;;  %v2757_v51 = vmul.f32 -1.442695, %v2174_v28 }
0x147f   :  { %v2382_v38 = vpop.f32.mrb[20].mxu1 }
0x1480   :  { %v2386_v41 = vadd.f32 %v2761_v34, %v2382_v38  ;;  %v3306_v42 = vpop.f32.mrb[21].mxu1 }
0x1482   :  { %3742 = vtanh.f32 %v2386_v41  ;;  %v2763_v54 = vmul.f32 -1.442695, %v2386_v41 }
0x1483   :  { %3744 = vpow2.f32 %v2751_v47 }
0x1484   :  { %v3741_v45 = vpop.eup %3740  ;;  %3746 = vpow2.f32 %v2757_v51 }
0x1485   :  { %2186 = vrot.lane.b32.xlu0 %v3741_v45, %s3839_s18 }
0x148c   :  { %v3743_v46 = vpop.eup %3742 }
0x148d   :  { %2396 = vrot.lane.b32.xlu1 %v3743_v46, %s3839_s18  ;;  %v3745_v18 = vpop.eup %3744 }
0x148e   :  { %v1970_v32 = vadd.f32 1.0, %v3745_v18  ;;  %v3747_v55 = vpop.eup %3746 }
0x148f   :  { %v2180_v44 = vadd.f32 1.0, %v3747_v55 }
0x1490   :  { %3748 = vrcp.f32 %v1970_v32 }
0x1491   :  { %3750 = vpow2.f32 %v2763_v54 }
0x1492   :  { %3752 = vrcp.f32 %v2180_v44 }
0x149a   :  { %v3749_v56 = vpop.eup %3748 }
0x149b   :  { %v3751_v61 = vpop.eup %3750  ;;  %v1974_v10 = vmul.f32 %v3749_v56, %v4390_v7 }
0x149c   :  { %v2390_v62 = vadd.f32 1.0, %v3751_v61  ;;  %v3753_v63 = vpop.eup %3752 }
0x149d   :  { %v2184_v60 = vmul.f32 %v3753_v63, %v4395_v11 }
0x149e   :  { %3754 = vrcp.f32 %v2390_v62 }
0x14a8   :  { %v3755_v53 = vpop.eup %3754 }
0x14a9   :  { %v2394_v19 = vmul.f32 %v3755_v53, %v4399_v14 }
0x14e7   :  { %v1977_v57 = vpop.permute.xlu1 %1976 }
0x14e8   :  { %v1979_v58 = vmul.f32 %v3749_v56, %v1977_v57 }
0x14ea   :  { %1981 = vrot.lane.b32.xlu0 %v1979_v58, %s3839_s18 }
0x14f7   :  { %v2187_v0 = vpop.permute.xlu0 %2186 }
0x14f8   :  { %v2189_v1 = vmul.f32 %v3753_v63, %v2187_v0 }
0x14fa   :  { %2191 = vrot.lane.b32.xlu1 %v2189_v1, %s3839_s18 }
0x14ff   :  { %v2397_v5 = vpop.permute.xlu1 %2396 }
0x1500   :  { %v2399_v9 = vmul.f32 %v3755_v53, %v2397_v5 }
0x1502   :  { %2401 = vrot.lane.b32.xlu0 %v2399_v9, %s3839_s18 }
0x155c   :  { %v1982_v59 = vpop.permute.xlu0 %1981 }
0x155d   :  { %v4458_v12 = vadd.f32 %v1982_v59, %v1974_v10 }
0x155f   :  { %3756 = vtanh.f32 %v4458_v12 }
0x1569   :  { %v3757_v13 = vpop.eup %3756 }
0x156a   :  { %1987 = vrot.lane.b32.xlu1 %v3757_v13, %s3839_s18 }
0x156c   :  { %v2192_v16 = vpop.permute.xlu1 %2191 }
0x156d   :  { %v4463_v17 = vadd.f32 %v2192_v16, %v2184_v60 }
0x156f   :  { %3758 = vtanh.f32 %v4463_v17 }
0x1574   :  { %v2402_v20 = vpop.permute.xlu0 %2401 }
0x1575   :  { %v4467_v2 = vadd.f32 %v2402_v20, %v2394_v19 }
0x1577   :  { %3760 = vtanh.f32 %v4467_v2 }
0x1579   :  { %v3759_v7 = vpop.eup %3758 }
0x157a   :  { %2197 = vrot.lane.b32.xlu0 %v3759_v7, %s3839_s18 }
0x1581   :  { %v3761_v21 = vpop.eup %3760 }
0x1582   :  { %2407 = vrot.lane.b32.xlu1 %v3761_v21, %s3839_s18 }
0x15dc   :  { %v1988_v23 = vpop.permute.xlu1 %1987 }
0x15dd   :  { %v4472_v11 = vmul.f32 %v3749_v56, %v1988_v23 }
0x15df   :  { %2205 = vrot.lane.b32.xlu1 %v4472_v11, %s3841_s2 }
0x15ec   :  { %v2198_v24 = vpop.permute.xlu0 %2197 }
0x15ed   :  { %v2200_v26 = vmul.f32 %v3753_v63, %v2198_v24 }
0x15ef   :  { %2202 = vrot.lane.b32.xlu0 %v2200_v26, %s3840_s1  ;;  %2415 = vrot.lane.b32.xlu1 %v2200_v26, %s3841_s2 }
0x15f4   :  { %v2408_v14 = vpop.permute.xlu1 %2407 }
0x15f5   :  { %v2410_v29 = vmul.f32 %v3755_v53, %v2408_v14 }
0x15f7   :  { %2412 = vrot.lane.b32.xlu0 %v2410_v29, %s3840_s1 }
0x1651   :  { %v2206_v30 = vpop.permute.xlu1 %2205 }
0x1661   :  { %v2203_v48 = vpop.permute.xlu0 %2202  ;;  %v2416_v50 = vpop.permute.xlu1 %2415 }
0x1662   :  { %v2208_v4 = vsel %vm80_vm2, %v2203_v48, %v2206_v30 }
0x1663   :  { %3294 = vmatmul.mubr.msk.f32.vlgmr.msra.gmra.mrb[20].mxu0 %vm198_vm3, %v2208_v4 }
0x1664   :  { %3563 = vmatpush3.bf16.msra.mxu0 %v3949_v31  ;;  %3323 = vmatprep.mubr.msk.f32.mxu0 %vm3837_vm0, %v3838_v6 }
0x1665   :  { %3564 = vmatprep.subr.bf16.mxu0 %v3836_v3 }
0x1668   :  { %3566 = vmatpush3.bf16.msra.mxu0 %v3955_v33 }
0x1669   :  { %v2413_v22 = vpop.permute.xlu0 %2412  ;;  %3567 = vmatprep.subr.bf16.mxu0 %v3836_v3 }
0x166a   :  { %2627 = vst.msk [vmem:[#allocation2] sm:$0x3] %vm35_vm1, %v2413_v22  ;;  %v2418_v35 = vsel %vm80_vm2, %v2413_v22, %v2416_v50 }
0x166c   :  { %3569 = vmatpush3.bf16.msra.mxu0 %v3965_v36 }
0x166d   :  { %3570 = vmatprep.subr.bf16.mxu0 %v3836_v3 }
0x1670   :  { %3572 = vmatpush3.bf16.msra.mxu0 %v3976_v40 }
0x1671   :  { %v2648_v31 = vld [vmem:[#allocation2] sm:$0x3] }
0x1672   :  { %2651 = vst.msk [vmem:[#allocation4] sm:$0x3] %vm35_vm1, %v2648_v31 }
0x1673   :  { %3324 = vmatmul.mubr.msk.f32.vlgmr.msra.gmra.mrb[22].mxu0 %vm198_vm3, %v2418_v35 }
0x1736   :  { %v2278_v6 = vpop.f32.mrb[20].mxu0 }
0x1737   :  { %v2279_v33 = vadd.f32 %v4444_v8, %v2278_v6  ;;  %v3295_v25 = vpop.f32.mrb[21].mxu0 }
0x1739   :  { %3762 = vtanh.f32 %v2279_v33  ;;  %v2759_v34 = vmul.f32 -1.442695, %v2279_v33 }
0x1743   :  { %v3763_v28 = vpop.eup %3762 }
0x1744   :  { %2291 = vrot.lane.b32.xlu0 %v3763_v28, %s3839_s18 }
0x1746   :  { %v2488_v36 = vpop.f32.mrb[22].mxu0 }
0x1747   :  { %v2489_v3 = vadd.f32 %v4378_v27, %v2488_v36  ;;  %v3325_v40 = vpop.f32.mrb[23].mxu0 }
0x1749   :  { %3764 = vtanh.f32 %v2489_v3  ;;  %v2765_v41 = vmul.f32 -1.442695, %v2489_v3 }
0x174a   :  { %3766 = vpow2.f32 %v2759_v34 }
0x174b   :  { %3768 = vpow2.f32 %v2765_v41 }
0x1753   :  { %v3765_v37 = vpop.eup %3764 }
0x1754   :  { %2501 = vrot.lane.b32.xlu1 %v3765_v37, %s3839_s18  ;;  %v3767_v38 = vpop.eup %3766 }
0x1755   :  { %v2285_v42 = vadd.f32 1.0, %v3767_v38  ;;  %v3769_v45 = vpop.eup %3768 }
0x1756   :  { %v2495_v51 = vadd.f32 1.0, %v3769_v45 }
0x1757   :  { %3770 = vrcp.f32 %v2285_v42 }
0x1758   :  { %3772 = vrcp.f32 %v2495_v51 }
0x1761   :  { %v3771_v46 = vpop.eup %3770 }
0x1762   :  { %v3773_v27 = vpop.eup %3772  ;;  %v2289_v55 = vmul.f32 %v3771_v46, %v4458_v12 }
0x1763   :  { %v2499_v44 = vmul.f32 %v3773_v27, %v4463_v17 }
0x17b6   :  { %v2292_v47 = vpop.permute.xlu0 %2291 }
0x17b7   :  { %v2294_v18 = vmul.f32 %v3771_v46, %v2292_v47 }
0x17b9   :  { %2296 = vrot.lane.b32.xlu0 %v2294_v18, %s3839_s18 }
0x17c6   :  { %v2502_v32 = vpop.permute.xlu1 %2501 }
0x17c7   :  { %v2504_v54 = vmul.f32 %v3773_v27, %v2502_v32 }
0x17c9   :  { %2506 = vrot.lane.b32.xlu1 %v2504_v54, %s3839_s18 }
0x182b   :  { %v2297_v56 = vpop.permute.xlu0 %2296 }
0x182c   :  { %v2299_v57 = vadd.f32 %v2297_v56, %v2289_v55 }
0x182e   :  { %3774 = vtanh.f32 %v2299_v57 }
0x1838   :  { %v3775_v58 = vpop.eup %3774 }
0x1839   :  { %2302 = vrot.lane.b32.xlu0 %v3775_v58, %s3839_s18 }
0x183b   :  { %v2507_v61 = vpop.permute.xlu1 %2506 }
0x183c   :  { %v2509_v62 = vadd.f32 %v2507_v61, %v2499_v44 }
0x183e   :  { %3776 = vtanh.f32 %v2509_v62 }
0x1848   :  { %v3777_v63 = vpop.eup %3776 }
0x1849   :  { %2512 = vrot.lane.b32.xlu1 %v3777_v63, %s3839_s18 }
0x18ab   :  { %v2303_v0 = vpop.permute.xlu0 %2302 }
0x18ac   :  { %v2305_v1 = vmul.f32 %v3771_v46, %v2303_v0 }
0x18ae   :  { %2520 = vrot.lane.b32.xlu1 %v2305_v1, %s3841_s2 }
0x18bb   :  { %v2513_v53 = vpop.permute.xlu1 %2512 }
0x18bc   :  { %v2515_v5 = vmul.f32 %v3773_v27, %v2513_v53 }
0x18be   :  { %2517 = vrot.lane.b32.xlu0 %v2515_v5, %s3840_s1 }
0x1920   :  { %v2521_v9 = vpop.permute.xlu1 %2520 }
0x1930   :  { %v2518_v10 = vpop.permute.xlu0 %2517 }
0x1931   :  { %v2523_v59 = vsel %vm80_vm2, %v2518_v10, %v2521_v9  ;;  %2633 = vst.msk [vmem:[#allocation2 + $0x2] sm:$0x3] %vm35_vm1, %v2518_v10 }
0x1932   :  { %3343 = vmatmul.mubr.msk.f32.vlgmr.msra.gmra.mrb[22].mxu1 %vm198_vm3, %v2523_v59 }
0x1938   :  { %v2649_v12 = vld [vmem:[#allocation2 + $0x2] sm:$0x3] }
0x1939   :  { %2652 = vst.msk [vmem:[#allocation4 + $0x2] sm:$0x3] %vm35_vm1, %v2649_v12 }
0x1a05   :  { %v2593_v13 = vpop.f32.mrb[22].mxu1 }
0x1a06   :  { %v2594_v60 = vadd.f32 %v4444_v8, %v2593_v13  ;;  %v3344_v16 = vpop.f32.mrb[23].mxu1 }
0x1a08   :  { %3778 = vtanh.f32 %v2594_v60  ;;  %v2767_v19 = vmul.f32 -1.442695, %v2594_v60 }
0x1a0a   :  { %3780 = vpow2.f32 %v2767_v19 }
0x1a12   :  { %v3779_v17 = vpop.eup %3778 }
0x1a13   :  { %2606 = vrot.lane.b32.xlu0 %v3779_v17, %s3839_s18 }
0x1a14   :  { %v3781_v20 = vpop.eup %3780 }
0x1a15   :  { %v2600_v7 = vadd.f32 1.0, %v3781_v20 }
0x1a17   :  { %3782 = vrcp.f32 %v2600_v7 }
0x1a21   :  { %v3783_v21 = vpop.eup %3782 }
0x1a22   :  { %v2604_v8 = vmul.f32 %v3783_v21, %v2299_v57 }
0x1a85   :  { %v2607_v23 = vpop.permute.xlu0 %2606 }
0x1a86   :  { %v2609_v24 = vmul.f32 %v3783_v21, %v2607_v23 }
0x1a88   :  { %2611 = vrot.lane.b32.xlu1 %v2609_v24, %s3839_s18 }
0x1a8c   :  { %2635 = vrot.lane.b32.xlu1 %v2509_v62, %s3841_s2 }
0x1a90   :  { %417 = vrot.lane.b32.xlu1 %v4143_v15, %s3840_s1 }
0x1afa   :  { %v2612_v26 = vpop.permute.xlu1 %2611 }
0x1afb   :  { %v2614_v14 = vadd.f32 %v2612_v26, %v2604_v8 }
0x1afd   :  { %3784 = vtanh.f32 %v2614_v14 }
0x1afe   :  { %v2636_v29 = vpop.permute.xlu1 %2635 }
0x1aff   :  { %2638 = vst.msk [vmem:[#allocation3 + $0x2] sm:$0x3] %vm35_vm1, %v2636_v29 }
0x1b02   :  { %v418_v30 = vpop.permute.xlu1 %417 }
0x1b03   :  { %421 = vst.msk [vmem:[%s4608_s6] sm:$0x3] %vm35_vm1, %v418_v30 }
0x1b06   :  { %v2655_v48 = vld [vmem:[#allocation3 + $0x2] sm:$0x3] }
0x1b07   :  { %v3785_v4 = vpop.eup %3784  ;;  %2658 = vst.msk [vmem:[#allocation6 + $0x2] sm:$0x3] %vm35_vm1, %v2655_v48 }
0x1b08   :  { %2617 = vrot.lane.b32.xlu0 %v3785_v4, %s3839_s18 }
0x1b0c   :  { %2629 = vrot.lane.b32.xlu0 %v4467_v2, %s3841_s2 }
0x1b10   :  { %2641 = vrot.lane.b32.xlu0 %v2614_v14, %s3841_s2 }
0x1b14   :  { %732 = vrot.lane.b32.xlu0 %v4207_v39, %s3840_s1 }
0x1b18   :  { %1362 = vrot.lane.b32.xlu0 %v4335_v43, %s3840_s1 }
0x1b1c   :  { %1992 = vrot.lane.b32.xlu0 %v4472_v11, %s3840_s1 }
0x1b7a   :  { %v2618_v15 = vpop.permute.xlu0 %2617 }
0x1b7b   :  { %v2620_v22 = vmul.f32 %v3783_v21, %v2618_v15 }
0x1b7d   :  { %2622 = vrot.lane.b32.xlu1 %v2620_v22, %s3840_s1 }
0x1b7e   :  { %v2630_v50 = vpop.permute.xlu0 %2629 }
0x1b7f   :  { %2632 = vst.msk [vmem:[#allocation3] sm:$0x3] %vm35_vm1, %v2630_v50 }
0x1b81   :  { %1047 = vrot.lane.b32.xlu1 %v4271_v49, %s3840_s1 }
0x1b82   :  { %v2642_v2 = vpop.permute.xlu0 %2641 }
0x1b83   :  { %2644 = vst.msk [vmem:[#allocation3 + $0x4] sm:$0x3] %vm35_vm1, %v2642_v2 }
0x1b85   :  { %1677 = vrot.lane.b32.xlu1 %v4404_v52, %s3840_s1 }
0x1b86   :  { %v733_v39 = vpop.permute.xlu0 %732  ;;  %v2654_v43 = vld [vmem:[#allocation3] sm:$0x3] }
0x1b87   :  { %2720 = vst.msk [vmem:[%s4608_s6 + $0x2] sm:$0x3] %vm35_vm1, %v733_v39  ;;  %2657 = vst.msk [vmem:[#allocation6] sm:$0x3] %vm35_vm1, %v2654_v43 }
0x1b89   :  { %2307 = vrot.lane.b32.xlu1 %v2305_v1, %s3840_s1 }
0x1b8a   :  { %v1363_v49 = vpop.permute.xlu0 %1362  ;;  %v2656_v11 = vld [vmem:[#allocation3 + $0x4] sm:$0x3] }
0x1b8b   :  { %2736 = vst.msk [vmem:[%s4608_s6 + $0x6] sm:$0x3] %vm35_vm1, %v1363_v49  ;;  %2659 = vst.msk [vmem:[#allocation6 + $0x4] sm:$0x3] %vm35_vm1, %v2656_v11 }
0x1b8c   :  { %3799 = shalt.err (!%p3796_p4)
}
0x1b8d   :  { %s3800_s1 = scalar_lea.hbm %s4610_s8, 96 }
0x1b8e   :  { %p3801_p5 = scmp.ne.s32.totalorder %s4610_s8, %s3800_s1  ;;  %p3804_p6 = scmp.lt.u32.totalorder %s3800_s1, %s4610_s8 }
0x1b90   :  { %p3806_p7 = pnand %p3804_p6, %p3801_p5 }
0x1b92   :  { %3809 = shalt.err (!%p3806_p7)
}
0x1b93   :  { %s3843_s4 = smov 2   ;;  %v1993_v52 = vpop.permute.xlu0 %1992  ;;  %s3844_s10 = smov [#allocation4]  }
0x1b94   :  { %2685 = dma.vmem_to_hbm [thread:$0]  %s2680_s15, 96, %s4610_s8, [#allocation7], %s3839_s18, %s3839_s18, %s3843_s4  }
0x1b95   :  { %2752 = vst.msk [vmem:[%s4608_s6 + $0xa] sm:$0x3] %vm35_vm1, %v1993_v52  ;;  %s2667_s11 = sshll.u32 %s3844_s10, 4  ;;  %s2668_s11 = int_to_ptr.vmem [resolvable:$true] %s2667_s11 }
0x1b96   :  { %s3810_s3 = scalar_lea.vmem %s2668_s11, 96  ;;  %p3815_p9 = scmp.lt.s32.totalorder %s2668_s11, %s2668_s11 }
0x1b97   :  { %p3811_p8 = scmp.ne.s32.totalorder %s2668_s11, %s3810_s3  ;;  %p3816_p10 = scmp.lt.s32.totalorder %s3810_s3, %s3810_s3 }
0x1b99   :  { %p3817_p11 = por %p3816_p10, %p3815_p9 }
0x1b9b   :  { %p3818_p12 = pnand %p3817_p11, %p3811_p8 }
0x1bef   :  { %v2623_v31 = vpop.permute.xlu1 %2622 }
0x1bf0   :  { %2768 = vst.msk [vmem:[%s4608_s6 + $0xe] sm:$0x3] %vm35_vm1, %v2623_v31  ;;  %2639 = vst.msk [vmem:[#allocation2 + $0x4] sm:$0x3] %vm35_vm1, %v2623_v31 }
0x1bf3   :  { %v1048_v35 = vpop.permute.xlu1 %1047 }
0x1bf4   :  { %2728 = vst.msk [vmem:[%s4608_s6 + $0x4] sm:$0x3] %vm35_vm1, %v1048_v35 }
0x1bf7   :  { %v1678_v6 = vpop.permute.xlu1 %1677  ;;  %v2650_v33 = vld [vmem:[#allocation2 + $0x4] sm:$0x3] }
0x1bf8   :  { %2744 = vst.msk [vmem:[%s4608_s6 + $0x8] sm:$0x3] %vm35_vm1, %v1678_v6  ;;  %2653 = vst.msk [vmem:[#allocation4 + $0x4] sm:$0x3] %vm35_vm1, %v2650_v33 }
0x1bf9   :  { %3821 = shalt.err (!%p3818_p12)
}
0x1bfa   :  { %s3822_s16 = scalar_lea.hbm %s4609_s7, 96 }
0x1bfb   :  { %p3823_p13 = scmp.ne.s32.totalorder %s4609_s7, %s3822_s16  ;;  %p3826_p0 = scmp.lt.u32.totalorder %s3822_s16, %s4609_s7 }
0x1bfd   :  { %p3828_p1 = pnand %p3826_p0, %p3823_p13 }
0x1bff   :  { %3831 = shalt.err (!%p3828_p1)
}
0x1c00   :  { %2673 = dma.vmem_to_hbm [thread:$0]  %s2668_s11, 96, %s4609_s7, [#allocation5], %s3839_s18, %s3839_s18, %s3843_s4   ;;  %v2308_v25 = vpop.permute.xlu1 %2307 }
0x1c01   :  { %2760 = vst.msk [vmem:[%s4608_s6 + $0xc] sm:$0x3] %vm35_vm1, %v2308_v25 }
0x1c02   :  { %3832 = dma.done.wait [#allocation5], 96  }
0x1c03   :  { %3833 = vsyncadd [#allocation5], 4294967200 }
0x1c04   :  { %3834 = dma.done.wait [#allocation7], 96  }
0x1c05   :  { %3835 = vsyncadd [#allocation7], 4294967200 }
0x1c06   :  { %2694 = vsyncpa [#allocation5], 1 }
0x1c07   :  { %2695 = vsyncpa [#allocation7], 1 }

</bundles_post_ra>
